<compile_context>
chip_gen: v6e
topology: v6e:2x2x1
jax: 0.10.0
libtpu: 0.0.40
codegen_flags: <defaults>
</compile_context>

<pallas_src>
import functools

import jax
import jax.numpy as jnp
import numpy as np
from jax.experimental import pallas as pl
from jax.experimental.pallas import tpu as pltpu

# ---------------- config ----------------
N_MARKERS = 12
D_IN = N_MARKERS * 3            # use_marker_pos only -> 36
N_JOINTS = 21
POSE_SIZE = (N_JOINTS + 1) * 3  # 66
SHAPE_SIZE = 10
HIDDEN = 128
H2 = 2 * HIDDEN                 # fused pose+shape hidden width = 256
W0CAT = 2 * H2                  # fused init+iter x-projection width = 512
OUT_PAD = 128                   # lane-dense output slab width (66 + 10 + pad)
N_ITERS = 3
STEP_SIZE = 0.5

BATCH = 2
SEQ = 8


def _round_up(n, m):
    return ((n + m - 1) // m) * m


# ---------------- Pallas kernel ----------------
def _ief_kernel(x_ref, w0cat_ref, w256_ref, w128_ref, out_ref,
                *, n_iters, offs256, offs128, split_w1):
    f32 = jnp.float32
    bf16 = jnp.bfloat16

    def g256(name):
        o, n = offs256[name]
        return w256_ref[o:o + n, :]

    def g128(name):
        o, n = offs128[name]
        return w128_ref[o:o + n, :]

    def dot(a, b):
        # bf16 operands, f32 accumulation on the MXU.
        return jnp.dot(a.astype(bf16), b, preferred_element_type=f32)

    def make_layer1(w_name, b_name):
        """Second (hidden->hidden) layer: fused 256-wide block-diag on v6e/v7x,
        un-fused into two 128x128 matmuls on v5e (split_w1=True)."""
        o, _ = offs256[w_name]
        b = g256(b_name)
        if split_w1:
            wp = w256_ref[o:o + HIDDEN, :HIDDEN]
            ws = w256_ref[o + HIDDEN:o + H2, HIDDEN:]

            def f(h):
                hp = jnp.dot(h[:, :HIDDEN].astype(bf16), wp,
                             preferred_element_type=f32)
                hs = jnp.dot(h[:, HIDDEN:].astype(bf16), ws,
                             preferred_element_type=f32)
                return jnp.maximum(jnp.concatenate([hp, hs], axis=1) + b, 0.0)
        else:
            w = w256_ref[o:o + H2, :]

            def f(h):
                return jnp.maximum(dot(h, w) + b, 0.0)
        return f

    x = x_ref[...]

    # One K=36 matmul feeds both the init-net hidden and the (hoisted,
    # loop-invariant) x-projection of the iter nets.
    xcat = dot(x, w0cat_ref[...])                              # (tm, 512) f32

    # --- init nets (pose|shape fused along the output axis) ---
    h = jnp.maximum(xcat[:, :H2] + g256("init_b0"), 0.0)
    init_layer1 = make_layer1("init_w1", "init_b1")
    h = init_layer1(h)
    # 128-lane state slab: pose in [:, :66], shape in [:, 66:76], zeros elsewhere
    state = dot(h, g128("init_w2")) + g128("init_b2")

    # --- hoisted loop-invariant x-projection of the iter nets (bias folded) ---
    xb = xcat[:, H2:] + g256("iter_b0")

    w0s = g256("iter_w0state")   # (128, 256) state projection (zero pad rows)
    iter_layer1 = make_layer1("iter_w1", "iter_b1")
    w2 = g128("iter_w2")         # (256, 128) fused output weight, step_size folded in
    b2 = g128("iter_b2")         # step_size folded in

    # --- N iterative refinement steps (small n_iters -> unrolled Python loop) ---
    for _ in range(n_iters):
        h = jnp.maximum(xb + dot(state, w0s), 0.0)
        h = iter_layer1(h)
        state = state + dot(h, w2) + b2   # f32 residual update

    out_ref[...] = state


# ---------------- host-side weight fusion + slab packing ----------------
def _split_w0(w0):
    wx = w0[:D_IN]
    wp = w0[D_IN:D_IN + POSE_SIZE]
    ws = w0[D_IN + POSE_SIZE:]
    return wx, wp, ws


def _pack_params(params, step_size):
    """Fuse pose/shape nets along the output axis and pack into bf16 VMEM slabs."""
    pi, si, pt, st = params
    H = HIDDEN
    PS = POSE_SIZE
    SS = SHAPE_SIZE

    # --- init nets fused ---
    init_w0 = jnp.concatenate([pi["w0"], si["w0"]], axis=1)            # (36, 256)
    init_b0 = jnp.concatenate([pi["b0"], si["b0"]], axis=1)            # (1, 256)
    init_w1 = (jnp.zeros((H2, H2), jnp.float32)
               .at[:H, :H].set(pi["w1"]).at[H:, H:].set(si["w1"]))     # block-diag
    init_b1 = jnp.concatenate([pi["b1"], si["b1"]], axis=1)
    init_w2 = (jnp.zeros((H2, OUT_PAD), jnp.float32)
               .at[:H, :PS].set(pi["w2"]).at[H:, PS:PS + SS].set(si["w2"]))
    init_b2 = (jnp.zeros((1, OUT_PAD), jnp.float32)
               .at[:, :PS].set(pi["b2"]).at[:, PS:PS + SS].set(si["b2"]))

    # --- iter nets fused (first-layer weight split into x / state blocks) ---
    pt_x, pt_p, pt_s = _split_w0(pt["w0"])
    st_x, st_p, st_s = _split_w0(st["w0"])
    iter_w0x = jnp.concatenate([pt_x, st_x], axis=1)                   # (36, 256)
    iter_w0state = (jnp.zeros((OUT_PAD, H2), jnp.float32)
                    .at[:PS, :H].set(pt_p).at[PS:PS + SS, :H].set(pt_s)
                    .at[:PS, H:].set(st_p).at[PS:PS + SS, H:].set(st_s))
    iter_b0 = jnp.concatenate([pt["b0"], st["b0"]], axis=1)
    iter_w1 = (jnp.zeros((H2, H2), jnp.float32)
               .at[:H, :H].set(pt["w1"]).at[H:, H:].set(st["w1"]))
    iter_b1 = jnp.concatenate([pt["b1"], st["b1"]], axis=1)
    # step_size folded into the fused output layer (exact: delta enters linearly)
    iter_w2 = (jnp.zeros((H2, OUT_PAD), jnp.float32)
               .at[:H, :PS].set(pt["w2"]).at[H:, PS:PS + SS].set(st["w2"])) * step_size
    iter_b2 = (jnp.zeros((1, OUT_PAD), jnp.float32)
               .at[:, :PS].set(pt["b2"]).at[:, PS:PS + SS].set(st["b2"])) * step_size

    # One (36, 512) weight feeds init hidden + iter x-projection with a single matmul.
    w0cat = jnp.concatenate([init_w0, iter_w0x], axis=1).astype(jnp.bfloat16)

    segs256 = [("init_b0", init_b0), ("init_w1", init_w1), ("init_b1", init_b1),
               ("iter_w0state", iter_w0state), ("iter_b0", iter_b0),
               ("iter_w1", iter_w1), ("iter_b1", iter_b1)]
    segs128 = [("init_w2", init_w2), ("init_b2", init_b2),
               ("iter_w2", iter_w2), ("iter_b2", iter_b2)]

    def pack(segs, width, align=16):   # 16-row alignment = native bf16 sublane tile
        offs = {}
        parts = []
        row = 0
        for name, a in segs:
            n = a.shape[0]
            n_pad = _round_up(n, align)
            offs[name] = (row, n)
            parts.append(a.astype(jnp.bfloat16))
            if n_pad > n:
                parts.append(jnp.zeros((n_pad - n, width), jnp.bfloat16))
            row += n_pad
        return jnp.concatenate(parts, axis=0), offs

    slab256, offs256 = pack(segs256, H2)
    slab128, offs128 = pack(segs128, OUT_PAD)
    return w0cat, slab256, slab128, offs256, offs128


def _default_split_w1():
    # v5e's MXU is 4x128x128: the 256-wide block-diagonal hidden layer there is
    # 50% structural zeros, so un-fuse it into two 128x128 matmuls on v5e only.
    try:
        kind = jax.devices()[0].device_kind.lower()
    except Exception:
        return False
    return ("v5 lite" in kind) or ("v5lite" in kind) or ("v5e" in kind)


# ---------------- wrapper ----------------
def ief_forward(x, params, *, n_iters=N_ITERS, step_size=STEP_SIZE,
                tile_m=2048, split_w1=None):
    """x: (B, F, D_IN) float32. Returns dict with pose_hat / root_ori_hat / shape_hat."""
    b, f, d = x.shape
    assert d == D_IN
    rows = b * f
    x_flat = x.reshape(rows, d).astype(jnp.float32)

    if split_w1 is None:
        split_w1 = _default_split_w1()

    # Row tile: multiple of 8, large by default, but keep >= 2 grid steps so
    # v7x's two TensorCores both get rows along the "parallel" axis.
    rows8 = _round_up(rows, 8)
    tm = min(_round_up(tile_m, 8), rows8)
    if rows8 > 8:
        tm = min(tm, _round_up(pl.cdiv(rows8, 2), 8))
    tm = max(tm, 8)
    rows_pad = _round_up(rows, tm)
    if rows_pad != rows:
        x_flat = jnp.pad(x_flat, ((0, rows_pad - rows), (0, 0)))

    w0cat, slab256, slab128, offs256, offs128 = _pack_params(params, step_size)

    # VMEM budget from actual buffer sizes: double-buffered x/out blocks,
    # (potentially double-buffered) bf16 weight slabs, f32 temporaries
    # (xcat 512 + h 256 + xb 256 + state 128 + slack 128 lanes per row),
    # +50% headroom, capped at 64 MiB for v7x's smaller physical VMEM.
    f32b = 4
    io_bytes = 2 * tm * D_IN * f32b + 2 * tm * OUT_PAD * f32b
    w_bytes = 2 * 2 * (w0cat.size + slab256.size + slab128.size)
    tmp_bytes = tm * (W0CAT + H2 + H2 + OUT_PAD + OUT_PAD) * f32b
    vmem_limit = max(32 << 20,
                     min(int(1.5 * (io_bytes + w_bytes + tmp_bytes)) + (4 << 20),
                         64 << 20))

    kernel = functools.partial(_ief_kernel, n_iters=n_iters,
                               offs256=offs256, offs128=offs128,
                               split_w1=split_w1)

    out = pl.pallas_call(
        kernel,
        out_shape=jax.ShapeDtypeStruct((rows_pad, OUT_PAD), jnp.float32),
        grid=(rows_pad // tm,),
        in_specs=[
            pl.BlockSpec((tm, D_IN), lambda i: (i, 0)),
            pl.BlockSpec(w0cat.shape, lambda i: (0, 0)),      # resident weights
            pl.BlockSpec(slab256.shape, lambda i: (0, 0)),    # resident weights
            pl.BlockSpec(slab128.shape, lambda i: (0, 0)),    # resident weights
        ],
        out_specs=pl.BlockSpec((tm, OUT_PAD), lambda i: (i, 0)),
        compiler_params=pltpu.CompilerParams(
            dimension_semantics=("parallel",),
            vmem_limit_bytes=vmem_limit,
        ),
    )(x_flat, w0cat, slab256, slab128)

    out = out[:rows]
    pose = out[:, :POSE_SIZE].reshape(b, f, POSE_SIZE)
    shape = out[:, POSE_SIZE:POSE_SIZE + SHAPE_SIZE].reshape(b, f, SHAPE_SIZE)
    # Matches all_model_out splitting: root orientation = first 3 dofs.
    return {
        "pose_hat": pose[:, :, 3:],
        "root_ori_hat": pose[:, :, :3],
        "shape_hat": shape,
    }


# ---------------- deterministic parameter init ----------------
def _init_linear(key, fan_in, fan_out):
    kw, kb = jax.random.split(key)
    bound = 1.0 / np.sqrt(fan_in)
    w = jax.random.uniform(kw, (fan_in, fan_out), jnp.float32, -bound, bound)
    b = jax.random.uniform(kb, (1, fan_out), jnp.float32, -bound, bound)
    return w, b


def _init_mlp(key, d_in, d_out, hidden):
    k0, k1, k2 = jax.random.split(key, 3)
    w0, b0 = _init_linear(k0, d_in, hidden)
    w1, b1 = _init_linear(k1, hidden, hidden)
    w2, b2 = _init_linear(k2, hidden, d_out)
    return {"w0": w0, "b0": b0, "w1": w1, "b1": b1, "w2": w2, "b2": b2}


def init_params(key):
    k_pi, k_si, k_pt, k_st = jax.random.split(key, 4)
    d_iter = D_IN + POSE_SIZE + SHAPE_SIZE
    pi = _init_mlp(k_pi, D_IN, POSE_SIZE, HIDDEN)
    si = _init_mlp(k_si, D_IN, SHAPE_SIZE, HIDDEN)
    pt = _init_mlp(k_pt, d_iter, POSE_SIZE, HIDDEN)
    st = _init_mlp(k_st, d_iter, SHAPE_SIZE, HIDDEN)
    return (pi, si, pt, st)


# ---------------- pure-JAX f32 reference (concat form) ----------------
def ief_reference(x, params):
    pi, si, pt, st = params
    b, f, d = x.shape
    xf = x.reshape(b * f, d)

    def mlp(h, p):
        h = jnp.maximum(h @ p["w0"] + p["b0"], 0.0)
        h = jnp.maximum(h @ p["w1"] + p["b1"], 0.0)
        return h @ p["w2"] + p["b2"]

    pose = mlp(xf, pi)
    shape = mlp(xf, si)
    for _ in range(N_ITERS):
        inp = jnp.concatenate([xf, pose, shape], axis=-1)
        pose = pose + STEP_SIZE * mlp(inp, pt)
        shape = shape + STEP_SIZE * mlp(inp, st)
    pose = pose.reshape(b, f, POSE_SIZE)
    shape = shape.reshape(b, f, SHAPE_SIZE)
    return {"pose_hat": pose[:, :, 3:], "root_ori_hat": pose[:, :, :3],
            "shape_hat": shape}


if __name__ == "__main__":
    key = jax.random.PRNGKey(0)
    k_param, k_x = jax.random.split(key)
    params = init_params(k_param)
    # synthetic marker positions: (B, F, n_markers*3)
    x = jax.random.normal(k_x, (BATCH, SEQ, D_IN), jnp.float32)

    out = jax.block_until_ready(ief_forward(x, params))
    ref = jax.block_until_ready(ief_reference(x, params))

    # bf16 matmuls (f32 accumulation) vs the f32 reference -> looser tolerance.
    for k in ("pose_hat", "root_ori_hat", "shape_hat"):
        np.testing.assert_allclose(np.asarray(out[k]), np.asarray(ref[k]),
                                   rtol=2e-2, atol=2e-2)
        assert out[k].shape == ref[k].shape

    print("KERNEL_OK")
</pallas_src>

<mosaic_0001>
module attributes {stable_mosaic.version = 11 : i64} {
  func.func @_ief_kernel(%arg0: i32, %arg1: memref<8x36xf32, #tpu.memory_space<vmem>>, %arg2: memref<36x512xbf16, #tpu.memory_space<vmem>>, %arg3: memref<704x256xbf16, #tpu.memory_space<vmem>>, %arg4: memref<544x128xbf16, #tpu.memory_space<vmem>>, %arg5: memref<8x128xf32, #tpu.memory_space<vmem>>) attributes {dimension_semantics = [#tpu.dimension_semantics<parallel>], iteration_bounds = array<i64: 2>, scalar_prefetch = 0 : i64, scratch_operands = 0 : i64, tpu.core_type = #tpu.core_type<tc>, window_params = [{transform_indices = @transform_0, window_bounds = array<i64: 8, 36>}, {pipeline_mode = #tpu.pipeline_mode<synchronous>, transform_indices = @transform_1, window_bounds = array<i64: 36, 512>}, {pipeline_mode = #tpu.pipeline_mode<synchronous>, transform_indices = @transform_2, window_bounds = array<i64: 704, 256>}, {pipeline_mode = #tpu.pipeline_mode<synchronous>, transform_indices = @transform_3, window_bounds = array<i64: 544, 128>}, {transform_indices = @transform_4, window_bounds = array<i64: 8, 128>}]} {
    %c0 = arith.constant 0 : index
    %c0_0 = arith.constant 0 : index
    %0 = vector.load %arg1[%c0, %c0_0] : memref<8x36xf32, #tpu.memory_space<vmem>>, vector<8x36xf32>
    %c0_1 = arith.constant 0 : index
    %c0_2 = arith.constant 0 : index
    %1 = vector.load %arg2[%c0_1, %c0_2] : memref<36x512xbf16, #tpu.memory_space<vmem>>, vector<36x512xbf16>
    %2 = arith.truncf %0 : vector<8x36xf32> to vector<8x36xbf16>
    %cst = arith.constant dense<0.000000e+00> : vector<8x512xf32>
    %3 = tpu.matmul %2, %1, %cst {dimension_numbers = #tpu.dot_dimension_numbers<[1], [0], [0], [1], [0, 0, 1, 1], [], []>} : vector<8x36xbf16>, vector<36x512xbf16>, vector<8x512xf32> -> vector<8x512xf32>
    %4 = vector.extract_strided_slice %3 {offsets = [0, 0], sizes = [8, 256], strides = [1, 1]} : vector<8x512xf32> to vector<8x256xf32>
    %c0_3 = arith.constant 0 : index
    %c0_4 = arith.constant 0 : index
    %5 = vector.load %arg3[%c0_3, %c0_4] : memref<704x256xbf16, #tpu.memory_space<vmem>>, vector<1x256xbf16>
    %6 = arith.extf %5 : vector<1x256xbf16> to vector<1x256xf32>
    %7 = vector.broadcast %6 : vector<1x256xf32> to vector<8x256xf32>
    %8 = arith.addf %4, %7 : vector<8x256xf32>
    %cst_5 = arith.constant 0.000000e+00 : f32
    %9 = vector.broadcast %cst_5 : f32 to vector<8x256xf32>
    %10 = arith.maximumf %8, %9 : vector<8x256xf32>
    %c272 = arith.constant 272 : index
    %c0_6 = arith.constant 0 : index
    %11 = vector.load %arg3[%c272, %c0_6] : memref<704x256xbf16, #tpu.memory_space<vmem>>, vector<1x256xbf16>
    %c16 = arith.constant 16 : index
    %c0_7 = arith.constant 0 : index
    %12 = vector.load %arg3[%c16, %c0_7] : memref<704x256xbf16, #tpu.memory_space<vmem>>, vector<256x256xbf16>
    %13 = arith.truncf %10 : vector<8x256xf32> to vector<8x256xbf16>
    %cst_8 = arith.constant dense<0.000000e+00> : vector<8x256xf32>
    %14 = tpu.matmul %13, %12, %cst_8 {dimension_numbers = #tpu.dot_dimension_numbers<[1], [0], [0], [1], [0, 0, 1, 1], [], []>} : vector<8x256xbf16>, vector<256x256xbf16>, vector<8x256xf32> -> vector<8x256xf32>
    %15 = arith.extf %11 : vector<1x256xbf16> to vector<1x256xf32>
    %16 = vector.broadcast %15 : vector<1x256xf32> to vector<8x256xf32>
    %17 = arith.addf %14, %16 : vector<8x256xf32>
    %cst_9 = arith.constant 0.000000e+00 : f32
    %18 = vector.broadcast %cst_9 : f32 to vector<8x256xf32>
    %19 = arith.maximumf %17, %18 : vector<8x256xf32>
    %c0_10 = arith.constant 0 : index
    %c0_11 = arith.constant 0 : index
    %20 = vector.load %arg4[%c0_10, %c0_11] : memref<544x128xbf16, #tpu.memory_space<vmem>>, vector<256x128xbf16>
    %21 = arith.truncf %19 : vector<8x256xf32> to vector<8x256xbf16>
    %cst_12 = arith.constant dense<0.000000e+00> : vector<8x128xf32>
    %22 = tpu.matmul %21, %20, %cst_12 {dimension_numbers = #tpu.dot_dimension_numbers<[1], [0], [0], [1], [0, 0, 1, 1], [], []>} : vector<8x256xbf16>, vector<256x128xbf16>, vector<8x128xf32> -> vector<8x128xf32>
    %c256 = arith.constant 256 : index
    %c0_13 = arith.constant 0 : index
    %23 = vector.load %arg4[%c256, %c0_13] : memref<544x128xbf16, #tpu.memory_space<vmem>>, vector<1x128xbf16>
    %24 = arith.extf %23 : vector<1x128xbf16> to vector<1x128xf32>
    %25 = vector.broadcast %24 : vector<1x128xf32> to vector<8x128xf32>
    %26 = arith.addf %22, %25 : vector<8x128xf32>
    %27 = vector.extract_strided_slice %3 {offsets = [0, 256], sizes = [8, 256], strides = [1, 1]} : vector<8x512xf32> to vector<8x256xf32>
    %c416 = arith.constant 416 : index
    %c0_14 = arith.constant 0 : index
    %28 = vector.load %arg3[%c416, %c0_14] : memref<704x256xbf16, #tpu.memory_space<vmem>>, vector<1x256xbf16>
    %29 = arith.extf %28 : vector<1x256xbf16> to vector<1x256xf32>
    %30 = vector.broadcast %29 : vector<1x256xf32> to vector<8x256xf32>
    %31 = arith.addf %27, %30 : vector<8x256xf32>
    %c288 = arith.constant 288 : index
    %c0_15 = arith.constant 0 : index
    %32 = vector.load %arg3[%c288, %c0_15] : memref<704x256xbf16, #tpu.memory_space<vmem>>, vector<128x256xbf16>
    %c688 = arith.constant 688 : index
    %c0_16 = arith.constant 0 : index
    %33 = vector.load %arg3[%c688, %c0_16] : memref<704x256xbf16, #tpu.memory_space<vmem>>, vector<1x256xbf16>
    %c432 = arith.constant 432 : index
    %c0_17 = arith.constant 0 : index
    %34 = vector.load %arg3[%c432, %c0_17] : memref<704x256xbf16, #tpu.memory_space<vmem>>, vector<256x256xbf16>
    %c272_18 = arith.constant 272 : index
    %c0_19 = arith.constant 0 : index
    %35 = vector.load %arg4[%c272_18, %c0_19] : memref<544x128xbf16, #tpu.memory_space<vmem>>, vector<256x128xbf16>
    %c528 = arith.constant 528 : index
    %c0_20 = arith.constant 0 : index
    %36 = vector.load %arg4[%c528, %c0_20] : memref<544x128xbf16, #tpu.memory_space<vmem>>, vector<1x128xbf16>
    %37 = arith.truncf %26 : vector<8x128xf32> to vector<8x128xbf16>
    %cst_21 = arith.constant dense<0.000000e+00> : vector<8x256xf32>
    %38 = tpu.matmul %37, %32, %cst_21 {dimension_numbers = #tpu.dot_dimension_numbers<[1], [0], [0], [1], [0, 0, 1, 1], [], []>} : vector<8x128xbf16>, vector<128x256xbf16>, vector<8x256xf32> -> vector<8x256xf32>
    %39 = arith.addf %31, %38 : vector<8x256xf32>
    %cst_22 = arith.constant 0.000000e+00 : f32
    %40 = vector.broadcast %cst_22 : f32 to vector<8x256xf32>
    %41 = arith.maximumf %39, %40 : vector<8x256xf32>
    %42 = arith.truncf %41 : vector<8x256xf32> to vector<8x256xbf16>
    %cst_23 = arith.constant dense<0.000000e+00> : vector<8x256xf32>
    %43 = tpu.matmul %42, %34, %cst_23 {dimension_numbers = #tpu.dot_dimension_numbers<[1], [0], [0], [1], [0, 0, 1, 1], [], []>} : vector<8x256xbf16>, vector<256x256xbf16>, vector<8x256xf32> -> vector<8x256xf32>
    %44 = arith.extf %33 : vector<1x256xbf16> to vector<1x256xf32>
    %45 = vector.broadcast %44 : vector<1x256xf32> to vector<8x256xf32>
    %46 = arith.addf %43, %45 : vector<8x256xf32>
    %cst_24 = arith.constant 0.000000e+00 : f32
    %47 = vector.broadcast %cst_24 : f32 to vector<8x256xf32>
    %48 = arith.maximumf %46, %47 : vector<8x256xf32>
    %49 = arith.truncf %48 : vector<8x256xf32> to vector<8x256xbf16>
    %cst_25 = arith.constant dense<0.000000e+00> : vector<8x128xf32>
    %50 = tpu.matmul %49, %35, %cst_25 {dimension_numbers = #tpu.dot_dimension_numbers<[1], [0], [0], [1], [0, 0, 1, 1], [], []>} : vector<8x256xbf16>, vector<256x128xbf16>, vector<8x128xf32> -> vector<8x128xf32>
    %51 = arith.addf %26, %50 : vector<8x128xf32>
    %52 = arith.extf %36 : vector<1x128xbf16> to vector<1x128xf32>
    %53 = vector.broadcast %52 : vector<1x128xf32> to vector<8x128xf32>
    %54 = arith.addf %51, %53 : vector<8x128xf32>
    %55 = arith.truncf %54 : vector<8x128xf32> to vector<8x128xbf16>
    %cst_26 = arith.constant dense<0.000000e+00> : vector<8x256xf32>
    %56 = tpu.matmul %55, %32, %cst_26 {dimension_numbers = #tpu.dot_dimension_numbers<[1], [0], [0], [1], [0, 0, 1, 1], [], []>} : vector<8x128xbf16>, vector<128x256xbf16>, vector<8x256xf32> -> vector<8x256xf32>
    %57 = arith.addf %31, %56 : vector<8x256xf32>
    %cst_27 = arith.constant 0.000000e+00 : f32
    %58 = vector.broadcast %cst_27 : f32 to vector<8x256xf32>
    %59 = arith.maximumf %57, %58 : vector<8x256xf32>
    %60 = arith.truncf %59 : vector<8x256xf32> to vector<8x256xbf16>
    %cst_28 = arith.constant dense<0.000000e+00> : vector<8x256xf32>
    %61 = tpu.matmul %60, %34, %cst_28 {dimension_numbers = #tpu.dot_dimension_numbers<[1], [0], [0], [1], [0, 0, 1, 1], [], []>} : vector<8x256xbf16>, vector<256x256xbf16>, vector<8x256xf32> -> vector<8x256xf32>
    %62 = arith.extf %33 : vector<1x256xbf16> to vector<1x256xf32>
    %63 = vector.broadcast %62 : vector<1x256xf32> to vector<8x256xf32>
    %64 = arith.addf %61, %63 : vector<8x256xf32>
    %cst_29 = arith.constant 0.000000e+00 : f32
    %65 = vector.broadcast %cst_29 : f32 to vector<8x256xf32>
    %66 = arith.maximumf %64, %65 : vector<8x256xf32>
    %67 = arith.truncf %66 : vector<8x256xf32> to vector<8x256xbf16>
    %cst_30 = arith.constant dense<0.000000e+00> : vector<8x128xf32>
    %68 = tpu.matmul %67, %35, %cst_30 {dimension_numbers = #tpu.dot_dimension_numbers<[1], [0], [0], [1], [0, 0, 1, 1], [], []>} : vector<8x256xbf16>, vector<256x128xbf16>, vector<8x128xf32> -> vector<8x128xf32>
    %69 = arith.addf %54, %68 : vector<8x128xf32>
    %70 = arith.extf %36 : vector<1x128xbf16> to vector<1x128xf32>
    %71 = vector.broadcast %70 : vector<1x128xf32> to vector<8x128xf32>
    %72 = arith.addf %69, %71 : vector<8x128xf32>
    %73 = arith.truncf %72 : vector<8x128xf32> to vector<8x128xbf16>
    %cst_31 = arith.constant dense<0.000000e+00> : vector<8x256xf32>
    %74 = tpu.matmul %73, %32, %cst_31 {dimension_numbers = #tpu.dot_dimension_numbers<[1], [0], [0], [1], [0, 0, 1, 1], [], []>} : vector<8x128xbf16>, vector<128x256xbf16>, vector<8x256xf32> -> vector<8x256xf32>
    %75 = arith.addf %31, %74 : vector<8x256xf32>
    %cst_32 = arith.constant 0.000000e+00 : f32
    %76 = vector.broadcast %cst_32 : f32 to vector<8x256xf32>
    %77 = arith.maximumf %75, %76 : vector<8x256xf32>
    %78 = arith.truncf %77 : vector<8x256xf32> to vector<8x256xbf16>
    %cst_33 = arith.constant dense<0.000000e+00> : vector<8x256xf32>
    %79 = tpu.matmul %78, %34, %cst_33 {dimension_numbers = #tpu.dot_dimension_numbers<[1], [0], [0], [1], [0, 0, 1, 1], [], []>} : vector<8x256xbf16>, vector<256x256xbf16>, vector<8x256xf32> -> vector<8x256xf32>
    %80 = arith.extf %33 : vector<1x256xbf16> to vector<1x256xf32>
    %81 = vector.broadcast %80 : vector<1x256xf32> to vector<8x256xf32>
    %82 = arith.addf %79, %81 : vector<8x256xf32>
    %cst_34 = arith.constant 0.000000e+00 : f32
    %83 = vector.broadcast %cst_34 : f32 to vector<8x256xf32>
    %84 = arith.maximumf %82, %83 : vector<8x256xf32>
    %85 = arith.truncf %84 : vector<8x256xf32> to vector<8x256xbf16>
    %cst_35 = arith.constant dense<0.000000e+00> : vector<8x128xf32>
    %86 = tpu.matmul %85, %35, %cst_35 {dimension_numbers = #tpu.dot_dimension_numbers<[1], [0], [0], [1], [0, 0, 1, 1], [], []>} : vector<8x256xbf16>, vector<256x128xbf16>, vector<8x128xf32> -> vector<8x128xf32>
    %87 = arith.addf %72, %86 : vector<8x128xf32>
    %88 = arith.extf %36 : vector<1x128xbf16> to vector<1x128xf32>
    %89 = vector.broadcast %88 : vector<1x128xf32> to vector<8x128xf32>
    %90 = arith.addf %87, %89 : vector<8x128xf32>
    %c0_36 = arith.constant 0 : index
    %c0_37 = arith.constant 0 : index
    %91 = vector.load %arg5[%c0_36, %c0_37] : memref<8x128xf32, #tpu.memory_space<vmem>>, vector<8x128xf32>
    tpu.vector_store %arg5[%c0_36, %c0_37], %90 {strides = array<i32>} : memref<8x128xf32, #tpu.memory_space<vmem>>, vector<8x128xf32>,
    return
  }
  func.func @transform_0(%arg0: i32) -> (i32, i32) {
    %c0_i32 = arith.constant 0 : i32
    %c0_i32_0 = arith.constant 0 : i32
    return %arg0, %c0_i32 : i32, i32
  }
  func.func @transform_1(%arg0: i32) -> (i32, i32) {
    %c0_i32 = arith.constant 0 : i32
    %c0_i32_0 = arith.constant 0 : i32
    %c0_i32_1 = arith.constant 0 : i32
    return %c0_i32, %c0_i32_0 : i32, i32
  }
  func.func @transform_2(%arg0: i32) -> (i32, i32) {
    %c0_i32 = arith.constant 0 : i32
    %c0_i32_0 = arith.constant 0 : i32
    %c0_i32_1 = arith.constant 0 : i32
    return %c0_i32, %c0_i32_0 : i32, i32
  }
  func.func @transform_3(%arg0: i32) -> (i32, i32) {
    %c0_i32 = arith.constant 0 : i32
    %c0_i32_0 = arith.constant 0 : i32
    %c0_i32_1 = arith.constant 0 : i32
    return %c0_i32, %c0_i32_0 : i32, i32
  }
  func.func @transform_4(%arg0: i32) -> (i32, i32) {
    %c0_i32 = arith.constant 0 : i32
    %c0_i32_0 = arith.constant 0 : i32
    return %arg0, %c0_i32 : i32, i32
  }
}

</mosaic_0001>

<bundles_post_ra>
// kernel: tpu_custom_call.1
= control target key start
LH: loop header
LB: loop body
LE: loop exit
PB: predicated region body
PF: predicated region fallthrough
CT: control target
= control target key end

     0   :  { %9 = vsyncpa [#allocation3], 0  ;;  %s3095_s0 = inlined_call_operand.hbm [shape: f32[16,36], index: 0, kind: input, shape index: {}]   ;;  %s3096_s1 = inlined_call_operand.hbm [shape: bf16[36,512], index: 1, kind: input, shape index: {}]   ;;  %s3097_s2 = inlined_call_operand.hbm [shape: bf16[704,256], index: 2, kind: input, shape index: {}]   ;;  %s3098_s3 = inlined_call_operand.hbm [shape: bf16[544,128], index: 3, kind: input, shape index: {}]   ;;  %s3099_s4 = inlined_call_operand.hbm [shape: f32[16,128], index: 4, kind: output, shape index: {}]  }
   0x1   :  { %11 = vsyncpa [#allocation3 + $0x1], 0 }
   0x2   :  { %12 = vsyncpa [#allocation6], 0 }
   0x3   :  { %13 = vsyncpa [#allocation9], 0 }
   0x4   :  { %14 = vsyncpa [#allocation4], 0 }
   0x5   :  { %16 = vsyncpa [#allocation4 + $0x1], 0  ;;  %s2526_s15 = smov 0   ;;  %s2528_s16 = smov 0  }
   0x6   :  { %s2530_s17 = smov 0   ;;  %s2532_s18 = smov 0  }
   0x7 LB: > { %s2547_s19 = sadd.s32 4294967295, %s2487_s18   ;;  %s1823_s20 = sadd.s32 4294967294, %s2487_s18   ;;  %s2487_s18 = sphi %s2532_s18, %s3213_s18   ;;  %s2483_s17 = sphi %s2530_s17, %s3212_s17   ;;  %s2479_s16 = sphi %s2528_s16, %s3211_s16   ;;  %s2475_s15 = sphi %s2526_s15, %s3210_s15  }
   0x8   : > { %p42_p0 = scmp.ne.s32.totalorder %s2479_s16, %s2475_s15  ;;  %p3100_p1 = scmp.eq.s32.totalorder %s2547_s19, 0 }
   0x9   : > { %p135_p3 = scmp.eq.s32.totalorder %s1823_s20, 1  ;;  %p1824_p5 = scmp.ge.s32.totalorder %s2487_s18, 1 }
   0xa   : > { %p2556_p4 = por %p3100_p1, %p42_p0  ;;  %p142_p7 = scmp.lt.s32.totalorder %s2487_s18, 3 }
   0xb   : > { %p2561_p6 = por %p135_p3, %p42_p0  ;;  %s2489_s24 = smov [#allocation5]  }
   0xc   : > { %s3141_s21 = scalar_select %p2556_p4, 1, 0 }
   0xd   : > { %s3142_s22 = scalar_select %p2561_p6, 1, 0 }
   0xe   : > { %p2566_p8 = pnand %p1824_p5, %p142_p7  ;;  %s154_s25 = sshll.u32 %s2489_s24, 4  ;;  %s155_s25 = int_to_ptr.vmem [resolvable:$true] %s154_s25 }
   0xf   : > { %s2490_s27 = smov [#allocation7]   ;;  %s2320_s29 = scalar_lea.vmem %s155_s25, 1280 }
  0x10   : > { %s3143_s23 = scalar_select %p2566_p8, 1, 0 }
  0x11   : > { %p2073_p9 = pneg %p2566_p8  ;;  %s167_s28 = sshll.u32 %s2490_s27, 4  ;;  %s168_s28 = int_to_ptr.vmem [resolvable:$true] %s167_s28 }
  0x12   : > { %p2321_p13 = scmp.ne.s32.totalorder %s155_s25, %s2320_s29  ;;  %p2328_p5 = scmp.lt.s32.totalorder %s155_s25, %s155_s25 }
  0x13   : > { %p2575_p11 = pnand %p2073_p9, %p3100_p1  ;;  %p2329_p7 = scmp.lt.s32.totalorder %s2320_s29, %s2320_s29 }
  0x15   : > { %p2311_p12 = pneg %p2575_p11  ;;  %p2330_p10 = por %p2329_p7, %p2328_p5 }
  0x17   : > { %p2323_p0 = pnand %p2321_p13, %p2311_p12 }
  0x19   : > { %p2324_p3 = pneg %p2323_p0 }
  0x1b   : > { %p2331_p9 = pnand %p2330_p10, %p2324_p3 }
  0x1d   : > { %2334 = shalt.err (!%p2331_p9)
}
  0x1e   : > { %s2491_s30 = smov 256   ;;  %s2492_s5 = smov 16  }
  0x1f   : > { %2076 = dma.hbm_to_vmem [thread:$0]  (!%p2575_p11), %s3096_s1, 1280, %s155_s25, [#allocation6], %s2491_s30, %s2491_s30, %s2492_s5  }
  0x20   : > { %s2346_s8 = scalar_lea.vmem %s168_s28, 11264  ;;  %p2354_p2 = scmp.lt.s32.totalorder %s168_s28, %s168_s28 }
  0x21   : > { %p2347_p1 = scmp.ne.s32.totalorder %s168_s28, %s2346_s8  ;;  %p2355_p6 = scmp.lt.s32.totalorder %s2346_s8, %s2346_s8 }
  0x23   : > { %p2349_p13 = pnand %p2347_p1, %p2311_p12  ;;  %p2356_p5 = por %p2355_p6, %p2354_p2 }
  0x25   : > { %p2350_p0 = pneg %p2349_p13 }
  0x27   : > { %p2357_p10 = pnand %p2356_p5, %p2350_p0 }
  0x29   : > { %2360 = shalt.err (!%p2357_p10)
}
  0x2a   : > { %s2493_s9 = smov 128   ;;  %s2494_s10 = smov 8  }
  0x2b   : > { %2079 = dma.hbm_to_vmem [thread:$0]  (!%p2575_p11), %s3097_s2, 11264, %s168_s28, [#allocation6], %s2493_s9, %s2493_s9, %s2494_s10  }
  0x2c   : > { %s2495_s13 = smov [#allocation8]  }
  0x2d   : > { %s180_s14 = sshll.u32 %s2495_s13, 4  ;;  %s181_s14 = int_to_ptr.vmem [resolvable:$true] %s180_s14 }
  0x2e   : > { %s2372_s20 = scalar_lea.vmem %s181_s14, 4352  ;;  %p2380_p6 = scmp.lt.s32.totalorder %s181_s14, %s181_s14 }
  0x2f   : > { %p2373_p1 = scmp.ne.s32.totalorder %s181_s14, %s2372_s20  ;;  %p2381_p7 = scmp.lt.s32.totalorder %s2372_s20, %s2372_s20 }
  0x31   : > { %p2375_p3 = pnand %p2373_p1, %p2311_p12  ;;  %p2382_p9 = por %p2381_p7, %p2380_p6 }
  0x33   : > { %p2376_p2 = pneg %p2375_p3 }
  0x35   : > { %p2383_p13 = pnand %p2382_p9, %p2376_p2 }
  0x37   : > { %2386 = shalt.err (!%p2383_p13)
}
  0x38   : > { %s2496_s24 = smov 64   ;;  %s2497_s25 = smov 4  }
  0x39   : > { %2082 = dma.hbm_to_vmem [thread:$0]  (!%p2575_p11), %s3098_s3, 4352, %s181_s14, [#allocation9], %s2496_s24, %s2496_s24, %s2497_s25  }
  0x3a   : > { %s2606_s29 = sadd.s32 1, %s2487_s18   ;;  %s29_s5 = sadd.s32 1, %s2483_s17 }
  0x3b   : > { %s26_s30 = ssub.s32 %s2487_s18, %s2606_s29  ;;  %p36_p0 = scmp.ne.s32.totalorder %s2483_s17, %s2479_s16 }
  0x3c   : > { %p27_p12 = scmp.eq.s32.totalorder %s26_s30, 0  ;;  %p37_p5 = scmp.eq.s32.totalorder %s2487_s18, 0 }
  0x3d   : > { %p2094_p10 = scmp.lt.s32.totalorder %s2487_s18, 2  ;;  %p3145_p3 = scmp.eq.s32.totalorder %s2547_s19, 1 }
  0x3e   : > { %s2616_s6 = scalar_select %p27_p12, %s2483_s17, %s29_s5  }
  0x3f   : > { %p38_p1 = por %p37_p5, %p36_p0  ;;  %p2620_p2 = por %p3145_p3, %p36_p0 }
  0x40   : > { %s194_s26 = sand.u32 1, %s2483_s17   ;;  %s1830_s8 = sshll.u32 %s2487_s18, 7 }
  0x41   : > { %s3146_s7 = scalar_select %p2620_p2, 1, 0 }
  0x42   : > { %s1829_s9 = sshll.u32 %s194_s26, 3  ;;  %s2629_s12 = scalar_lea.hbm %s3095_s0, %s1830_s8 }
  0x43   : > { %s198_s13 = scalar_lea.vmem [#allocation2], %s1829_s9  ;;  %p2631_p11 = pnand %p2094_p10, %p38_p1 }
  0x44   : > { %s205_s14 = sshll.u32 %s198_s13, 4  ;;  %s195_s24 = scalar_lea.sflag [#allocation3], %s194_s26  ;;  %s206_s14 = int_to_ptr.vmem [resolvable:$true] %s205_s14 }
  0x45   : > { %s2387_s25 = scalar_lea.hbm %s2629_s12, 128  ;;  %p2389_p7 = pneg %p2631_p11 }
  0x46   : > { %p2388_p6 = scmp.ne.s32.totalorder %s2629_s12, %s2387_s25  ;;  %s2392_s30 = scalar_lea.hbm %s3095_s0, 256 }
  0x47   : > { %p2393_p12 = scmp.lt.s32.totalorder %s2629_s12, %s3095_s0  ;;  %p2394_p0 = scmp.lt.s32.totalorder %s2392_s30, %s2387_s25 }
  0x48   : > { %p2390_p9 = pnand %p2389_p7, %p2388_p6 }
  0x49   : > { %p2395_p5 = por %p2394_p0, %p2393_p12 }
  0x4a   : > { %p2391_p13 = pneg %p2390_p9 }
  0x4c   : > { %p2396_p10 = pnand %p2395_p5, %p2391_p13 }
  0x4e   : > { %2399 = shalt.err (!%p2396_p10)
}
  0x4f   : > { %s2400_s9 = scalar_lea.vmem %s206_s14, 128  ;;  %s2498_s26 = smov [#allocation2]  }
  0x50   : > { %p2401_p1 = scmp.ne.s32.totalorder %s206_s14, %s2400_s9  ;;  %s2405_s10 = sshll.u32 %s2498_s26, 4  ;;  %s2406_s10 = int_to_ptr.vmem [resolvable:$false] %s2405_s10 }
  0x51   : > { %s2407_s11 = scalar_lea.vmem %s2406_s10, 256  ;;  %p2408_p6 = scmp.lt.s32.totalorder %s206_s14, %s2406_s10 }
  0x52   : > { %p2403_p3 = pnand %p2401_p1, %p2389_p7  ;;  %p2409_p9 = scmp.lt.s32.totalorder %s2407_s11, %s2400_s9 }
  0x54   : > { %p2404_p2 = pneg %p2403_p3  ;;  %p2410_p4 = por %p2409_p9, %p2408_p6 }
  0x56   : > { %p2411_p8 = pnand %p2410_p4, %p2404_p2 }
  0x58   : > { %2414 = shalt.err (!%p2411_p8)
}
  0x59   : > { %2086 = dma.hbm_to_vmem [thread:$0]  (!%p2631_p11), %s2629_s12, 128, %s206_s14, %s195_s24  }
  0x5a   : > { %p3148_p13 = scmp.ne.s32.totalorder %s3143_s23, 0 }
  0x5c   : > { %214 = sbr.rel (%p3148_p13) target bundleno = 2560 (0xa00), region = 36 }
  0x61   : > { %s2652_s13 = sand.u32 1, %s2479_s16   ;;  %p3149_p4 = scmp.ne.s32.totalorder %s3141_s21, 0 }
  0x62   : > { %s1832_s25 = sshll.u32 %s2652_s13, 3  ;;  %s217_s27 = scalar_lea.sflag [#allocation3], %s2652_s13 }
  0x63   : > { %s220_s28 = scalar_lea.vmem [#allocation2], %s1832_s25 }
  0x64   : > { %2458 = dma.done.wait (%p3149_p4), %s217_s27, 128  }
  0x65   : > { %2460 = vsyncadd (%p3149_p4), %s217_s27, 4294967168  ;;  %p3150_p8 = scmp.eq.s32.totalorder %s2547_s19, 0 }
  0x67   : > { %2462 = dma.done.wait (%p3150_p8), [#allocation6], 12544   ;;  %p3151_p2 = pmov %p3150_p8 }
  0x69   : > { %2464 = vsyncadd (%p3151_p2), [#allocation6], 4294954752  ;;  %p3152_p11 = pmov %p3151_p2 }
  0x6a   : > { %p3153_p7 = pmov %p3151_p2 }
  0x6b   : > { %2466 = dma.done.wait (%p3152_p11), [#allocation9], 4352  }
  0x6c   : > { %2468 = vsyncadd (%p3153_p7), [#allocation9], 4294962944  ;;  %v3104_v0 = vmov 0   ;;  %v267_v1 = vld [vmem:[#allocation5 + $0x40] sm:$0x33]  ;;  %vm324_vm0 = vcmask 1041408   ;;  %v422_v63 = vlaneseq }
  0x6d   : > { %369 = vmatprep.mubr.bf16.mxu1 %v3104_v0  ;;  %v1846_v2 = vcombine.high %v267_v1, %v267_v1  ;;  %v1845_v3 = vcombine.low %v267_v1, %v267_v1  ;;  %v2143_v4 = vld [vmem:[#allocation5 + $0x24] ss:$16 sps:$4 sm:$0xff]   ;;  %v2145_v6 = vld [vmem:[#allocation5 + $0x20] ss:$16 sps:$4 sm:$0xff]   ;;  %vm320_vm1 = vcmask 293888   ;;  %v2205_v51 = vld [vmem:[#allocation8 + $0x78] sm:$0xff]  }
  0x6e   : > { %v2149_v7 = vld [vmem:[#allocation7 + $0x84] ss:$8 sps:$4 sm:$0xff]   ;;  %v2151_v8 = vld [vmem:[#allocation7 + $0x80] ss:$8 sps:$4 sm:$0xff]   ;;  %v2152_v10 = vld [vmem:[#allocation7 + $0x74] ss:$8 sps:$4 sm:$0xff]  }
  0x6f   : > { %1849 = vmatprep.subr.msk.bf16.mxu1 %vm324_vm0, %v1846_v2  ;;  %v326_v5 = vsel %vm324_vm0, %v1845_v3, 0  ;;  %v2146_v9 = vld [vmem:[#allocation5 + $0x4] ss:$16 sps:$4 sm:$0xff]   ;;  %v2148_v11 = vld [vmem:[#allocation5] ss:$16 sps:$4 sm:$0xff]   ;;  %639 = vmatprep.subr.bf16.mxu0 %v2149_v7  ;;  %v2206_v52 = vld [vmem:[#allocation8 + $0x38] sm:$0xff]  }
  0x70   : > { %348 = vmatpush1.bf16.msra.mxu1 %v326_v5  ;;  %640 = vmatpush1.bf16.msra.mxu0 %v2151_v8  ;;  %v2154_v12 = vld [vmem:[#allocation7 + $0x70] ss:$8 sps:$4 sm:$0xff]   ;;  %v258_v13 = vld [vmem:[%s220_s28] sm:$0xff]  ;;  %v2158_v17 = vld [vmem:[#allocation7 + $0x54] ss:$8 sps:$4 sm:$0xff]   ;;  %v423_v1 = vshrl.u32 %v422_v63, 7 }
  0x71   : > { %349 = vmatprep.subr.bf16.mxu1 %v2143_v4  ;;  %641 = vmatprep.subr.bf16.mxu0 %v2152_v10  ;;  %v2155_v14 = vld [vmem:[#allocation7 + $0x64] ss:$8 sps:$4 sm:$0xff]   ;;  %v2673_v15 = vpack.c.bf16 %v258_v13, %v258_v13  ;;  %v2157_v16 = vld [vmem:[#allocation7 + $0x60] ss:$8 sps:$4 sm:$0xff]   ;;  %v2160_v18 = vld [vmem:[#allocation7 + $0x50] ss:$8 sps:$4 sm:$0xff]  }
  0x72   : > { %v2161_v19 = vld [vmem:[#allocation7 + $0x44] ss:$8 sps:$4 sm:$0xff]   ;;  %v2163_v20 = vld [vmem:[#allocation7 + $0x40] ss:$8 sps:$4 sm:$0xff]   ;;  %v2164_v21 = vld [vmem:[#allocation7 + $0x34] ss:$8 sps:$4 sm:$0xff]  }
  0x73   : > { %v2166_v22 = vld [vmem:[#allocation7 + $0x30] ss:$8 sps:$4 sm:$0xff]   ;;  %v2167_v23 = vld [vmem:[#allocation7 + $0x24] ss:$8 sps:$4 sm:$0xff]   ;;  %v2169_v24 = vld [vmem:[#allocation7 + $0x20] ss:$8 sps:$4 sm:$0xff]  }
  0x74   : > { %350 = vmatpush1.bf16.msra.mxu1 %v2145_v6  ;;  %642 = vmatpush1.bf16.msra.mxu0 %v2154_v12  ;;  %v2170_v25 = vld [vmem:[#allocation7 + $0x14] ss:$8 sps:$4 sm:$0xff]   ;;  %v2172_v26 = vld [vmem:[#allocation7 + $0x10] ss:$8 sps:$4 sm:$0xff]   ;;  %v2173_v27 = vld [vmem:[#allocation7 + $0x104] ss:$8 sps:$4 sm:$0xff]  }
  0x75   : > { %351 = vmatprep.subr.bf16.mxu1 %v2146_v9  ;;  %643 = vmatprep.subr.bf16.mxu0 %v2155_v14  ;;  %v2175_v28 = vld [vmem:[#allocation7 + $0x100] ss:$8 sps:$4 sm:$0xff]   ;;  %v2176_v29 = vld [vmem:[#allocation7 + $0xf4] ss:$8 sps:$4 sm:$0xff]   ;;  %v2178_v30 = vld [vmem:[#allocation7 + $0xf0] ss:$8 sps:$4 sm:$0xff]  }
  0x76   : > { %v2179_v31 = vld [vmem:[#allocation7 + $0xe4] ss:$8 sps:$4 sm:$0xff]   ;;  %v2181_v32 = vld [vmem:[#allocation7 + $0xe0] ss:$8 sps:$4 sm:$0xff]   ;;  %v2182_v33 = vld [vmem:[#allocation7 + $0xd4] ss:$8 sps:$4 sm:$0xff]  }
  0x77   : > { %v2184_v34 = vld [vmem:[#allocation7 + $0xd0] ss:$8 sps:$4 sm:$0xff]   ;;  %v2185_v35 = vld [vmem:[#allocation7 + $0xc4] ss:$8 sps:$4 sm:$0xff]   ;;  %v2187_v36 = vld [vmem:[#allocation7 + $0xc0] ss:$8 sps:$4 sm:$0xff]  }
  0x78   : > { %352 = vmatpush1.bf16.msra.mxu1 %v2148_v11  ;;  %644 = vmatpush1.bf16.msra.mxu0 %v2157_v16  ;;  %v2188_v37 = vld [vmem:[#allocation7 + $0xb4] ss:$8 sps:$4 sm:$0xff]   ;;  %v2190_v38 = vld [vmem:[#allocation7 + $0xb0] ss:$8 sps:$4 sm:$0xff]   ;;  %v2191_v39 = vld [vmem:[#allocation7 + $0xa4] ss:$8 sps:$4 sm:$0xff]  }
  0x79   : > { %645 = vmatprep.subr.bf16.mxu0 %v2158_v17  ;;  %v2193_v40 = vld [vmem:[#allocation7 + $0xa0] ss:$8 sps:$4 sm:$0xff]   ;;  %v2194_v41 = vld [vmem:[#allocation7 + $0x94] ss:$8 sps:$4 sm:$0xff]   ;;  %v2196_v42 = vld [vmem:[#allocation7 + $0x90] ss:$8 sps:$4 sm:$0xff]  }
  0x7a   : > { %v268_v43 = vld [vmem:[#allocation5 + $0x48] sm:$0x33]  ;;  %v2207_v53 = vld [vmem:[#allocation8 + $0x70] sm:$0xff]   ;;  %v2209_v55 = vld [vmem:[#allocation8 + $0x68] sm:$0xff]   ;;  %v2682_v4 = vsub.s32 0, %v423_v1  ;;  %s1966_s21 = sshll.u32 %s2547_s19, 7 }
  0x7b   : > { %1850 = vmatmul.mubr.msk.bf16.vlgmr.msra.gmra.mxu1 %vm320_vm1, %v2673_v15  ;;  %v1848_v44 = vcombine.high %v268_v43, %v268_v43  ;;  %v1847_v45 = vcombine.low %v268_v43, %v268_v43  ;;  %v2201_v46 = vld [vmem:[#allocation5 + $0x2c] ss:$16 sps:$4 sm:$0xff]   ;;  %v2199_v48 = vld [vmem:[#allocation5 + $0x28] ss:$16 sps:$4 sm:$0xff]   ;;  %v2208_v54 = vld [vmem:[#allocation8 + $0x30] sm:$0xff]   ;;  %s256_s23 = scalar_lea.vmem [#allocation10], %s1832_s25  ;;  %s1722_s24 = scalar_lea.hbm %s3099_s4, %s1966_s21 }
  0x7c   : > { %410 = vmatprep.mubr.bf16.mxu1 %v3104_v0  ;;  %646 = vmatpush1.bf16.msra.mxu0 %v2160_v18  ;;  %v2204_v49 = vld [vmem:[#allocation5 + $0xc] ss:$16 sps:$4 sm:$0xff]   ;;  %v2202_v50 = vld [vmem:[#allocation5 + $0x8] ss:$16 sps:$4 sm:$0xff]   ;;  %v2211_v57 = vld [vmem:[#allocation8 + $0x60] sm:$0xff]   ;;  %s1724_s12 = sshll.u32 %s256_s23, 4  ;;  %s1725_s12 = int_to_ptr.vmem [resolvable:$true] %s1724_s12 }
  0x7d   : > { %647 = vmatprep.subr.bf16.mxu0 %v2161_v19  ;;  %1851 = vmatprep.subr.msk.bf16.mxu1 %vm324_vm0, %v1848_v44  ;;  %v332_v47 = vsel %vm324_vm0, %v1847_v45, 0  ;;  %v2210_v56 = vld [vmem:[#allocation8 + $0x28] sm:$0xff]   ;;  %v2212_v58 = vld [vmem:[#allocation8 + $0x20] sm:$0xff]   ;;  %v2213_v59 = vld [vmem:[#allocation8 + $0x58] sm:$0xff]   ;;  %s1711_s30 = scalar_lea.sflag [#allocation4], %s2652_s13  ;;  %s2415_s5 = scalar_lea.vmem %s1725_s12, 128 }
  0x7e   : > { %389 = vmatpush1.bf16.msra.mxu1 %v332_v47  ;;  %v2214_v60 = vld [vmem:[#allocation8 + $0x18] sm:$0xff]   ;;  %v2215_v61 = vld [vmem:[#allocation8 + $0x50] sm:$0xff]   ;;  %v419_v2 = vld [vmem:[#allocation7] sm:$0x11]  ;;  %p2416_p12 = scmp.ne.s32.totalorder %s1725_s12, %s2415_s5  ;;  %p3207_p0 = scmp.ne.s32.totalorder %s3146_s7, 0 }
  0x7f   : > { %390 = vmatprep.subr.bf16.mxu1 %v2201_v46  ;;  %v2216_v62 = vld [vmem:[#allocation8 + $0x10] sm:$0xff]   ;;  %v420_v3 = vunpack.c.l.bf16 %v419_v2  ;;  %v421_v5 = vunpack.c.h.bf16 %v419_v2  ;;  %v2217_v18 = vld [vmem:[#allocation8 + $0x48] sm:$0xff]   ;;  %s2500_s19 = smov [#allocation10]  }
  0x80   : > { %648 = vmatpush1.bf16.msra.mxu0 %v2163_v20  ;;  %v2218_v19 = vld [vmem:[#allocation8 + $0x8] sm:$0xff]   ;;  %v2219_v20 = vld [vmem:[#allocation8 + $0x40] sm:$0xff]   ;;  %v2704_v45 = vld [vmem:[#allocation7 + $0x174] ss:$8 sps:$4 sm:$0xff]   ;;  %p2417_p5 = pnand %p2416_p12, %p3207_p0  ;;  %s2419_s8 = sshll.u32 %s2500_s19, 4  ;;  %s2420_s8 = int_to_ptr.vmem [resolvable:$false] %s2419_s8 }
  0x81   : > { %649 = vmatprep.subr.bf16.mxu0 %v2164_v21  ;;  %v425_v6 = vrot.slane %v420_v3, %v2682_v4  ;;  %v429_v7 = vrot.slane %v421_v5, %v2682_v4  ;;  %v2220_v21 = vld [vmem:[#allocation8] sm:$0xff]   ;;  %v2707_v46 = vld [vmem:[#allocation7 + $0x170] ss:$8 sps:$4 sm:$0xff]   ;;  %v2758_v63 = vld [vmem:[#allocation7 + $0x1f4] ss:$8 sps:$4 sm:$0xff]   ;;  %s2421_s9 = scalar_lea.vmem %s2420_s8, 256  ;;  %p2422_p1 = scmp.lt.s32.totalorder %s1725_s12, %s2420_s8 }
  0x82   : > { %391 = vmatpush1.bf16.msra.mxu1 %v2199_v48  ;;  %v2697_v43 = vld [vmem:[#allocation7 + $0x184] ss:$8 sps:$4 sm:$0xff]   ;;  %v2700_v44 = vld [vmem:[#allocation7 + $0x180] ss:$8 sps:$4 sm:$0xff]   ;;  %v2761_v1 = vld [vmem:[#allocation7 + $0x1f0] ss:$8 sps:$4 sm:$0xff]   ;;  %p2418_p10 = pneg %p2417_p5  ;;  %p2423_p3 = scmp.lt.s32.totalorder %s2421_s9, %s2415_s5 }
  0x83   : > { %392 = vmatprep.subr.bf16.mxu1 %v2204_v49  ;;  %v2710_v47 = vld [vmem:[#allocation7 + $0x164] ss:$8 sps:$4 sm:$0xff]   ;;  %v2713_v48 = vld [vmem:[#allocation7 + $0x160] ss:$8 sps:$4 sm:$0xff]   ;;  %v2716_v49 = vld [vmem:[#allocation7 + $0x154] ss:$8 sps:$4 sm:$0xff]  }
  0x84   : > { %650 = vmatpush1.bf16.msra.mxu0 %v2166_v22  ;;  %v2686_v22 = vld [vmem:[#allocation7 + $0x194] ss:$8 sps:$4 sm:$0xff]   ;;  %v2764_v2 = vld [vmem:[#allocation7 + $0x1e4] ss:$8 sps:$4 sm:$0xff]   ;;  %v2767_v3 = vld [vmem:[#allocation7 + $0x1e0] ss:$8 sps:$4 sm:$0xff]   ;;  %p2424_p6 = por %p2423_p3, %p2422_p1 }
  0x85   : > { %651 = vmatprep.subr.bf16.mxu0 %v2167_v23  ;;  %v2770_v5 = vld [vmem:[#allocation7 + $0x1d4] ss:$8 sps:$4 sm:$0xff]  }
  0x86   : > { %393 = vmatpush1.bf16.msra.mxu1 %v2202_v50  ;;  %v2719_v50 = vld [vmem:[#allocation7 + $0x150] ss:$8 sps:$4 sm:$0xff]   ;;  %p2425_p9 = pnand %p2424_p6, %p2418_p10 }
  0x87   : > { %1969 = vmatprep.subr.bf16.mxu1 %v2205_v51  ;;  %v2722_v51 = vld [vmem:[#allocation7 + $0x144] ss:$8 sps:$4 sm:$0xff]  }
  0x88   : > { %652 = vmatpush1.bf16.msra.mxu0 %v2169_v24 }
  0x89   : > { %653 = vmatprep.subr.bf16.mxu0 %v2170_v25  ;;  %1852 = vmatmul.mubr.msk.bf16.vlgmr.msra.gmra.mxu1 %vm320_vm1, %v2673_v15 }
  0x8a   : > { %1970 = vmatpush3.bf16.msra.mxu1 %v2206_v52  ;;  %v2725_v52 = vld [vmem:[#allocation7 + $0x140] ss:$8 sps:$4 sm:$0xff]  }
  0x8b   : > { %1971 = vmatprep.subr.bf16.mxu1 %v2207_v53  ;;  %v2729_v53 = vld [vmem:[#allocation7 + $0x134] ss:$8 sps:$4 sm:$0xff]  }
  0x8c   : > { %654 = vmatpush1.bf16.msra.mxu0 %v2172_v26  ;;  %3154 = vst [vmem:[#allocation15_spill] sm:$0xff] %v2729_v53 }
  0x8d   : > { %655 = vmatprep.subr.bf16.mxu0 %v2173_v27  ;;  %v434_v27 = vld [vmem:[#allocation7 + $0x110] sm:$0x11] }
  0x8e   : > { %1972 = vmatpush3.bf16.msra.mxu1 %v2208_v54  ;;  %v2731_v54 = vld [vmem:[#allocation7 + $0x130] ss:$8 sps:$4 sm:$0xff]  }
  0x8f   : > { %1973 = vmatprep.subr.bf16.mxu1 %v2209_v55  ;;  %3155 = vst [vmem:[#allocation16_spill] sm:$0xff] %v2731_v54  ;;  %v2735_v55 = vld [vmem:[#allocation7 + $0x124] ss:$8 sps:$4 sm:$0xff]  }
  0x90   : > { %656 = vmatpush2.bf16.msra.mxu0 %v2175_v28  ;;  %v469_v28 = vunpack.c.l.bf16 %v434_v27  ;;  %3156 = vst [vmem:[#allocation17_spill] sm:$0xff] %v2735_v55 }
  0x91   : > { %657 = vmatprep.subr.bf16.mxu0 %v2176_v29  ;;  %v470_v29 = vunpack.c.h.bf16 %v434_v27 }
  0x92   : > { %1974 = vmatpush3.bf16.msra.mxu1 %v2210_v56  ;;  %v2737_v56 = vld [vmem:[#allocation7 + $0x120] ss:$8 sps:$4 sm:$0xff]  }
  0x93   : > { %1975 = vmatprep.subr.bf16.mxu1 %v2211_v57  ;;  %3157 = vst [vmem:[#allocation18_spill] sm:$0xff] %v2737_v56  ;;  %v2741_v57 = vld [vmem:[#allocation7 + $0x220] ss:$8 sps:$4 sm:$0xff]  }
  0x94   : > { %658 = vmatpush2.bf16.msra.mxu0 %v2178_v30  ;;  %v474_v30 = vrot.slane %v469_v28, %v2682_v4 }
  0x95   : > { %659 = vmatprep.subr.bf16.mxu0 %v2179_v31  ;;  %v478_v31 = vrot.slane %v470_v29, %v2682_v4 }
  0x96   : > { %1976 = vmatpush3.bf16.msra.mxu1 %v2212_v58  ;;  %v2743_v58 = vld [vmem:[#allocation7 + $0x224] ss:$8 sps:$4 sm:$0xff]  }
  0x97   : > { %1977 = vmatprep.subr.bf16.mxu1 %v2213_v59  ;;  %v2745_v59 = vld [vmem:[#allocation7 + $0x214] ss:$8 sps:$4 sm:$0xff]  }
  0x98   : > { %660 = vmatpush2.bf16.msra.mxu0 %v2181_v32 }
  0x99   : > { %661 = vmatprep.subr.bf16.mxu0 %v2182_v33 }
  0x9a   : > { %1978 = vmatpush3.bf16.msra.mxu1 %v2214_v60  ;;  %v2749_v60 = vld [vmem:[#allocation7 + $0x210] ss:$8 sps:$4 sm:$0xff]  }
  0x9b   : > { %1979 = vmatprep.subr.bf16.mxu1 %v2215_v61  ;;  %v2752_v61 = vld [vmem:[#allocation7 + $0x204] ss:$8 sps:$4 sm:$0xff]  }
  0x9c   : > { %662 = vmatpush2.bf16.msra.mxu0 %v2184_v34 }
  0x9d   : > { %663 = vmatprep.subr.bf16.mxu0 %v2185_v35 }
  0x9e   : > { %1980 = vmatpush3.bf16.msra.mxu1 %v2216_v62  ;;  %v2755_v62 = vld [vmem:[#allocation7 + $0x200] ss:$8 sps:$4 sm:$0xff]  }
  0x9f   : > { %1981 = vmatprep.subr.bf16.mxu1 %v2217_v18  ;;  %v2809_v18 = vld [vmem:[#allocation7 + $0x270] ss:$8 sps:$4 sm:$0xff]  }
  0xa0   : > { %664 = vmatpush2.bf16.msra.mxu0 %v2187_v36 }
  0xa1   : > { %665 = vmatprep.subr.bf16.mxu0 %v2188_v37 }
  0xa2   : > { %1982 = vmatpush3.bf16.msra.mxu1 %v2218_v19  ;;  %v2812_v19 = vld [vmem:[#allocation7 + $0x264] ss:$8 sps:$4 sm:$0xff]  }
  0xa3   : > { %1983 = vmatprep.subr.bf16.mxu1 %v2219_v20  ;;  %v2815_v20 = vld [vmem:[#allocation7 + $0x260] ss:$8 sps:$4 sm:$0xff]  }
  0xa4   : > { %666 = vmatpush2.bf16.msra.mxu0 %v2190_v38 }
  0xa5   : > { %667 = vmatprep.subr.bf16.mxu0 %v2191_v39 }
  0xa6   : > { %1984 = vmatpush3.bf16.msra.mxu1 %v2220_v21  ;;  %v2818_v21 = vld [vmem:[#allocation7 + $0x254] ss:$8 sps:$4 sm:$0xff]  }
  0xa7   : > { %1034 = vmatprep.subr.bf16.mxu1 %v2686_v22 }
  0xa8   : > { %668 = vmatpush2.bf16.msra.mxu0 %v2193_v40 }
  0xa9   : > { %669 = vmatprep.subr.bf16.mxu0 %v2194_v41  ;;  %v2695_v41 = vld [vmem:[#allocation7 + $0x190] ss:$8 sps:$4 sm:$0xff]  }
  0xac   : > { %670 = vmatpush2.bf16.msra.mxu0 %v2196_v42 }
  0xad   : > { %1251 = vmatprep.subr.bf16.mxu0 %v2743_v58 }
 0x13b   : > { %v371_v8 = vpop.f32.mrf.mxu1 }
 0x13c   : > { %v430_v9 = vadd.f32 %v425_v6, %v371_v8  ;;  %v2773_v6 = vld [vmem:[#allocation7 + $0x1d0] ss:$8 sps:$4 sm:$0xff]   ;;  %v2779_v8 = vld [vmem:[#allocation7 + $0x1c0] ss:$8 sps:$4 sm:$0xff]  }
 0x13d   : > { %v373_v10 = vpop.f32.mrf.mxu1 }
 0x13e   : > { %v431_v11 = vadd.f32 %v429_v7, %v373_v10  ;;  %v432_v12 = vmax.f32 %v430_v9, 0.0  ;;  %v2776_v7 = vld [vmem:[#allocation7 + $0x1c4] ss:$8 sps:$4 sm:$0xff]   ;;  %v2782_v9 = vld [vmem:[#allocation7 + $0x1b4] ss:$8 sps:$4 sm:$0xff]  }
 0x13f   : > { %v375_v13 = vpop.f32.mrf.mxu1  ;;  %v2785_v10 = vld [vmem:[#allocation7 + $0x1b0] ss:$8 sps:$4 sm:$0xff]  }
 0x140   : > { %v433_v14 = vmax.f32 %v431_v11, 0.0  ;;  %v467_v17 = vpack.c.bf16 %v432_v12, %v432_v12  ;;  %v2788_v11 = vld [vmem:[#allocation7 + $0x2a4] ss:$8 sps:$4 sm:$0xff]   ;;  %v2791_v12 = vld [vmem:[#allocation7 + $0x2a0] ss:$8 sps:$4 sm:$0xff]  }
 0x141   : > { %v376_v15 = vpop.f32.mrf.mxu1  ;;  %v2794_v13 = vld [vmem:[#allocation7 + $0x294] ss:$8 sps:$4 sm:$0xff]  }
 0x142   : > { %v468_v16 = vpack.c.bf16 %v433_v14, %v433_v14  ;;  %v2797_v14 = vld [vmem:[#allocation7 + $0x290] ss:$8 sps:$4 sm:$0xff]   ;;  %v2800_v15 = vld [vmem:[#allocation7 + $0x284] ss:$8 sps:$4 sm:$0xff]  }
 0x144   : > { %671 = vmatprep.mubr.bf16.mxu0 %v468_v16  ;;  %v2803_v16 = vld [vmem:[#allocation7 + $0x280] ss:$8 sps:$4 sm:$0xff]  }
 0x145   : > { %672 = vmatmul.mubr.bf16.vlgmr.msra.gmra.mxu0 %v467_v17  ;;  %v2806_v17 = vld [vmem:[#allocation7 + $0x274] ss:$8 sps:$4 sm:$0xff]  }
 0x146   : > { %1252 = vmatpush1.bf16.msra.mxu0 %v2741_v57 }
 0x147   : > { %1253 = vmatprep.subr.bf16.mxu0 %v2745_v59 }
 0x149   : > { %v2689_v23 = vpop.f32.mrf.mxu1 }
 0x14a   : > { %1254 = vmatpush1.bf16.msra.mxu0 %v2749_v60 }
 0x14b   : > { %v2691_v24 = vpop.f32.mrf.mxu1  ;;  %1255 = vmatprep.subr.bf16.mxu0 %v2752_v61 }
 0x14d   : > { %v416_v25 = vpop.f32.mrf.mxu1 }
 0x14e   : > { %1256 = vmatpush1.bf16.msra.mxu0 %v2755_v62  ;;  %v2821_v25 = vld [vmem:[#allocation7 + $0x250] ss:$8 sps:$4 sm:$0xff]  }
 0x14f   : > { %v417_v26 = vpop.f32.mrf.mxu1  ;;  %1257 = vmatprep.subr.bf16.mxu0 %v2758_v63 }
 0x150   : > { %v716_v26 = vld [vmem:[#allocation8 + $0x80] sm:$0x1] }
 0x151   : > { %v717_v27 = vunpack.c.l.bf16 %v716_v26  ;;  %v2847_v26 = vld [vmem:[#allocation8 + $0xf8] sm:$0xff]  }
 0x152   : > { %1258 = vmatpush1.bf16.msra.mxu0 %v2761_v1  ;;  %3164 = vst [vmem:[#allocation25_spill] sm:$0xff] %v2847_v26 }
 0x153   : > { %1259 = vmatprep.subr.bf16.mxu0 %v2764_v2  ;;  %v721_v29 = vrot.slane %v717_v27, %v2682_v4  ;;  %v2851_v27 = vld [vmem:[#allocation8 + $0xb8] sm:$0xff]  }
 0x154   : > { %3165 = vst [vmem:[#allocation26_spill] sm:$0xff] %v2851_v27 }
 0x156   : > { %1260 = vmatpush1.bf16.msra.mxu0 %v2767_v3 }
 0x157   : > { %1261 = vmatprep.subr.bf16.mxu0 %v2770_v5 }
 0x15a   : > { %1262 = vmatpush1.bf16.msra.mxu0 %v2773_v6 }
 0x15b   : > { %1263 = vmatprep.subr.bf16.mxu0 %v2776_v7 }
 0x15e   : > { %1264 = vmatpush1.bf16.msra.mxu0 %v2779_v8 }
 0x15f   : > { %1265 = vmatprep.subr.bf16.mxu0 %v2782_v9 }
 0x162   : > { %1266 = vmatpush1.bf16.msra.mxu0 %v2785_v10 }
 0x163   : > { %1267 = vmatprep.subr.bf16.mxu0 %v2788_v11 }
 0x166   : > { %1268 = vmatpush2.bf16.msra.mxu0 %v2791_v12 }
 0x167   : > { %1269 = vmatprep.subr.bf16.mxu0 %v2794_v13 }
 0x16a   : > { %1270 = vmatpush2.bf16.msra.mxu0 %v2797_v14 }
 0x16b   : > { %1271 = vmatprep.subr.bf16.mxu0 %v2800_v15 }
 0x16e   : > { %1272 = vmatpush2.bf16.msra.mxu0 %v2803_v16 }
 0x16f   : > { %1273 = vmatprep.subr.bf16.mxu0 %v2806_v17 }
 0x172   : > { %1274 = vmatpush2.bf16.msra.mxu0 %v2809_v18 }
 0x173   : > { %1275 = vmatprep.subr.bf16.mxu0 %v2812_v19 }
 0x176   : > { %1276 = vmatpush2.bf16.msra.mxu0 %v2815_v20 }
 0x177   : > { %1277 = vmatprep.subr.bf16.mxu0 %v2818_v21 }
 0x17a   : > { %1278 = vmatpush2.bf16.msra.mxu0 %v2821_v25 }
 0x205   : > { %v673_v32 = vpop.f32.mrf.mxu0 }
 0x206   : > { %v674_v33 = vadd.f32 %v673_v32, %v474_v30 }
 0x207   : > { %v675_v34 = vpop.f32.mrf.mxu0 }
 0x208   : > { %v676_v35 = vadd.f32 %v675_v34, %v478_v31  ;;  %v680_v36 = vmax.f32 %v674_v33, 0.0 }
 0x209   : > { %v677_v37 = vpop.f32.mrf.mxu0 }
 0x20a   : > { %v681_v38 = vmax.f32 %v676_v35, 0.0  ;;  %v714_v42 = vpack.c.bf16 %v680_v36, %v680_v36  ;;  %v2830_v36 = vld [vmem:[#allocation7 + $0x244] ss:$8 sps:$4 sm:$0xff]   ;;  %v2832_v37 = vld [vmem:[#allocation7 + $0x240] ss:$8 sps:$4 sm:$0xff]  }
 0x20b   : > { %v678_v39 = vpop.f32.mrf.mxu0  ;;  %3159 = vst [vmem:[#allocation20_spill] sm:$0xff] %v2832_v37  ;;  %1279 = vmatprep.subr.bf16.mxu0 %v2830_v36 }
 0x20c   : > { %v715_v40 = vpack.c.bf16 %v681_v38, %v681_v38  ;;  %1280 = vmatpush2.bf16.msra.mxu0 %v2832_v37  ;;  %v2836_v38 = vld [vmem:[#allocation7 + $0x234] ss:$8 sps:$4 sm:$0xff]   ;;  %v2838_v39 = vld [vmem:[#allocation7 + $0x230] ss:$8 sps:$4 sm:$0xff]  }
 0x20d   : > { %3160 = vst [vmem:[#allocation21_spill] sm:$0xff] %v2836_v38  ;;  %3161 = vst [vmem:[#allocation22_spill] sm:$0xff] %v2838_v39  ;;  %1281 = vmatprep.subr.bf16.mxu0 %v2836_v38 }
 0x20e   : > { %850 = vmatprep.mubr.bf16.mxu1 %v715_v40  ;;  %v2843_v40 = vld [vmem:[#allocation8 + $0x100] sm:$0xff]  }
 0x20f   : > { %851 = vmatmul.mubr.bf16.vlgmr.msra.gmra.mxu1 %v714_v42  ;;  %3162 = vst [vmem:[#allocation23_spill] sm:$0xff] %v2843_v40  ;;  %v2845_v42 = vld [vmem:[#allocation8 + $0xc0] sm:$0xff]  }
 0x210   : > { %1035 = vmatpush1.bf16.msra.mxu1 %v2695_v41  ;;  %1066 = vmatprep.mubr.bf16.mxu1 %v3104_v0  ;;  %3163 = vst [vmem:[#allocation24_spill] sm:$0xff] %v2845_v42  ;;  %v2875_v0 = vld [vmem:[#allocation8 + $0x98] sm:$0xff]  }
 0x211   : > { %1036 = vmatprep.subr.bf16.mxu1 %v2697_v43  ;;  %1282 = vmatpush2.bf16.msra.mxu0 %v2838_v39  ;;  %3173 = vst [vmem:[#allocation34_spill] sm:$0xff] %v2875_v0 }
 0x212   : > { %1487 = vmatprep.subr.bf16.mxu0 %v2743_v58 }
 0x214   : > { %1037 = vmatpush1.bf16.msra.mxu1 %v2700_v44 }
 0x215   : > { %1038 = vmatprep.subr.bf16.mxu1 %v2704_v45 }
 0x218   : > { %1039 = vmatpush1.bf16.msra.mxu1 %v2707_v46 }
 0x219   : > { %1040 = vmatprep.subr.bf16.mxu1 %v2710_v47 }
 0x21c   : > { %1041 = vmatpush1.bf16.msra.mxu1 %v2713_v48 }
 0x21d   : > { %1042 = vmatprep.subr.bf16.mxu1 %v2716_v49 }
 0x220   : > { %1043 = vmatpush1.bf16.msra.mxu1 %v2719_v50 }
 0x221   : > { %1044 = vmatprep.subr.bf16.mxu1 %v2722_v51 }
 0x224   : > { %1045 = vmatpush1.bf16.msra.mxu1 %v2725_v52 }
 0x225   : > { %1046 = vmatprep.subr.bf16.mxu1 %v2729_v53 }
 0x228   : > { %1047 = vmatpush1.bf16.msra.mxu1 %v2731_v54 }
 0x229   : > { %1048 = vmatprep.subr.bf16.mxu1 %v2735_v55 }
 0x22c   : > { %1049 = vmatpush1.bf16.msra.mxu1 %v2737_v56 }
 0x22d   : > { %1991 = vmatprep.subr.bf16.mxu1 %v2843_v40 }
 0x2cf   : > { %v1985_v28 = vpop.f32.mrf.mxu1 }
 0x2d1   : > { %v1986_v30 = vpop.f32.mrf.mxu1 }
 0x2d2   : > { %v1987_v31 = vadd.f32 %v1986_v30, %v1985_v28  ;;  %v2854_v28 = vld [vmem:[#allocation8 + $0xf0] sm:$0xff]   ;;  %v2860_v30 = vld [vmem:[#allocation8 + $0xe8] sm:$0xff]  }
 0x2d3   : > { %v1988_v32 = vpop.f32.mrf.mxu1  ;;  %3166 = vst [vmem:[#allocation27_spill] sm:$0xff] %v2854_v28  ;;  %3168 = vst [vmem:[#allocation29_spill] sm:$0xff] %v2860_v30 }
 0x2d4   : > { %v2826_v33 = vadd.f32 %v1987_v31, %v721_v29  ;;  %v2857_v29 = vld [vmem:[#allocation8 + $0xb0] sm:$0xff]   ;;  %v2863_v31 = vld [vmem:[#allocation8 + $0xa8] sm:$0xff]   ;;  %v2866_v32 = vld [vmem:[#allocation8 + $0xe0] sm:$0xff]  }
 0x2d5   : > { %v1989_v34 = vpop.f32.mrf.mxu1  ;;  %3167 = vst [vmem:[#allocation28_spill] sm:$0xff] %v2857_v29  ;;  %3169 = vst [vmem:[#allocation30_spill] sm:$0xff] %v2863_v31 }
 0x2d6   : > { %3158 = vst [vmem:[#allocation19_spill] sm:$0xff] %v2826_v33  ;;  %v953_v35 = vpack.c.bf16 %v2826_v33, %v2826_v33  ;;  %3170 = vst [vmem:[#allocation31_spill] sm:$0xff] %v2866_v32  ;;  %v2869_v34 = vld [vmem:[#allocation8 + $0xa0] sm:$0xff]  }
 0x2d7   : > { %3171 = vst [vmem:[#allocation32_spill] sm:$0xff] %v2869_v34 }
 0x2d8   : > { %1067 = vmatmul.mubr.bf16.vlgmr.msra.gmra.mxu1 %v953_v35  ;;  %v2872_v35 = vld [vmem:[#allocation8 + $0xd8] sm:$0xff]  }
 0x2d9   : > { %1992 = vmatpush3.bf16.msra.mxu1 %v2845_v42  ;;  %3172 = vst [vmem:[#allocation33_spill] sm:$0xff] %v2872_v35 }
 0x2da   : > { %1993 = vmatprep.subr.bf16.mxu1 %v2847_v26 }
 0x2dd   : > { %1994 = vmatpush3.bf16.msra.mxu1 %v2851_v27 }
 0x2de   : > { %1995 = vmatprep.subr.bf16.mxu1 %v2854_v28 }
 0x2e1   : > { %1996 = vmatpush3.bf16.msra.mxu1 %v2857_v29  ;;  %v858_v29 = vld [vmem:[#allocation7 + $0x1a0] sm:$0x11] }
 0x2e2   : > { %1997 = vmatprep.subr.bf16.mxu1 %v2860_v30  ;;  %v859_v30 = vunpack.c.l.bf16 %v858_v29  ;;  %v860_v28 = vunpack.c.h.bf16 %v858_v29 }
 0x2e4   : > { %v864_v27 = vrot.slane %v859_v30, %v2682_v4 }
 0x2e5   : > { %1998 = vmatpush3.bf16.msra.mxu1 %v2863_v31  ;;  %v868_v31 = vrot.slane %v860_v28, %v2682_v4 }
 0x2e6   : > { %1999 = vmatprep.subr.bf16.mxu1 %v2866_v32  ;;  %v2882_v26 = vadd.f32 %v864_v27, %v2689_v23  ;;  %v2923_v23 = vld [vmem:[#allocation8 + $0x90] sm:$0xff]  }
 0x2e7   : > { %v2885_v42 = vadd.f32 %v868_v31, %v2691_v24  ;;  %v2927_v24 = vld [vmem:[#allocation8 + $0xc8] sm:$0xff]  }
 0x2e9   : > { %2000 = vmatpush3.bf16.msra.mxu1 %v2869_v34 }
 0x2ea   : > { %2001 = vmatprep.subr.bf16.mxu1 %v2872_v35 }
 0x2ed   : > { %2002 = vmatpush3.bf16.msra.mxu1 %v2875_v0 }
 0x398   : > { %v1068_v32 = vpop.f32.mrf.mxu1 }
 0x399   : > { %v1075_v34 = vadd.f32 %v1068_v32, %v2882_v26 }
 0x39a   : > { %v1070_v33 = vpop.f32.mrf.mxu1 }
 0x39b   : > { %v1076_v35 = vadd.f32 %v1070_v33, %v2885_v42  ;;  %v1077_v0 = vmax.f32 %v1075_v34, 0.0 }
 0x39c   : > { %v1072_v40 = vpop.f32.mrf.mxu1 }
 0x39d   : > { %v1078_v56 = vmax.f32 %v1076_v35, 0.0  ;;  %v1079_v30 = vpack.c.bf16 %v1077_v0, %v1077_v0  ;;  %v2921_v0 = vld [vmem:[#allocation8 + $0xd0] sm:$0xff]  }
 0x39e   : > { %v1073_v29 = vpop.f32.mrf.mxu1  ;;  %3174 = vst [vmem:[#allocation35_spill] sm:$0xff] %v2921_v0  ;;  %2003 = vmatprep.subr.bf16.mxu1 %v2921_v0 }
 0x39f   : > { %v1080_v55 = vpack.c.bf16 %v1078_v56, %v1078_v56  ;;  %2004 = vmatpush3.bf16.msra.mxu1 %v2923_v23  ;;  %v887_v56 = vld [vmem:[#allocation7 + $0x2b0] sm:$0x11] }
 0x3a0   : > { %2005 = vmatprep.subr.bf16.mxu1 %v2927_v24  ;;  %v1082_v33 = vunpack.c.h.bf16 %v887_v56 }
 0x3a1   : > { %1283 = vmatprep.mubr.bf16.mxu0 %v1080_v55  ;;  %v2929_v55 = vld [vmem:[#allocation8 + $0x88] sm:$0xff]  }
 0x3a2   : > { %1284 = vmatmul.mubr.bf16.vlgmr.msra.gmra.mxu0 %v1079_v30  ;;  %v2938_v27 = vrot.slane %v1082_v33, %v2682_v4 }
 0x3a3   : > { %1488 = vmatpush1.bf16.msra.mxu0 %v2741_v57  ;;  %2006 = vmatpush3.bf16.msra.mxu1 %v2929_v55 }
 0x3a4   : > { %1489 = vmatprep.subr.bf16.mxu0 %v2745_v59  ;;  %1440 = vmatprep.subr.bf16.mxu1 %v2686_v22 }
 0x3a7   : > { %1490 = vmatpush1.bf16.msra.mxu0 %v2749_v60 }
 0x3a8   : > { %1491 = vmatprep.subr.bf16.mxu0 %v2752_v61 }
 0x3ab   : > { %1492 = vmatpush1.bf16.msra.mxu0 %v2755_v62 }
 0x3ac   : > { %1493 = vmatprep.subr.bf16.mxu0 %v2758_v63 }
 0x3af   : > { %1494 = vmatpush1.bf16.msra.mxu0 %v2761_v1 }
 0x3b0   : > { %1495 = vmatprep.subr.bf16.mxu0 %v2764_v2 }
 0x3b3   : > { %1496 = vmatpush1.bf16.msra.mxu0 %v2767_v3 }
 0x3b4   : > { %1497 = vmatprep.subr.bf16.mxu0 %v2770_v5 }
 0x3b7   : > { %1498 = vmatpush1.bf16.msra.mxu0 %v2773_v6 }
 0x3b8   : > { %1499 = vmatprep.subr.bf16.mxu0 %v2776_v7 }
 0x3bb   : > { %1500 = vmatpush1.bf16.msra.mxu0 %v2779_v8 }
 0x3bc   : > { %1501 = vmatprep.subr.bf16.mxu0 %v2782_v9 }
 0x3bf   : > { %1502 = vmatpush1.bf16.msra.mxu0 %v2785_v10 }
 0x3c0   : > { %1503 = vmatprep.subr.bf16.mxu0 %v2788_v11 }
 0x3c3   : > { %1504 = vmatpush2.bf16.msra.mxu0 %v2791_v12 }
 0x3c4   : > { %1505 = vmatprep.subr.bf16.mxu0 %v2794_v13 }
 0x3c7   : > { %1506 = vmatpush2.bf16.msra.mxu0 %v2797_v14 }
 0x3c8   : > { %1507 = vmatprep.subr.bf16.mxu0 %v2800_v15 }
 0x3cb   : > { %1508 = vmatpush2.bf16.msra.mxu0 %v2803_v16 }
 0x3cc   : > { %1509 = vmatprep.subr.bf16.mxu0 %v2806_v17 }
 0x3cf   : > { %1510 = vmatpush2.bf16.msra.mxu0 %v2809_v18 }
 0x3d0   : > { %1511 = vmatprep.subr.bf16.mxu0 %v2812_v19 }
 0x3d3   : > { %1512 = vmatpush2.bf16.msra.mxu0 %v2815_v20 }
 0x3d4   : > { %1513 = vmatprep.subr.bf16.mxu0 %v2818_v21 }
 0x3d7   : > { %1514 = vmatpush2.bf16.msra.mxu0 %v2821_v25 }
 0x3d8   : > { %1515 = vmatprep.subr.bf16.mxu0 %v2830_v36 }
 0x3db   : > { %1516 = vmatpush2.bf16.msra.mxu0 %v2832_v37 }
 0x3dc   : > { %1517 = vmatprep.subr.bf16.mxu0 %v2836_v38 }
 0x3df   : > { %1518 = vmatpush2.bf16.msra.mxu0 %v2838_v39 }
 0x3e0   : > { %1622 = vmatprep.subr.bf16.mxu0 %v2743_v58  ;;  %v1081_v58 = vunpack.c.l.bf16 %v887_v56  ;;  %v3175_v56 = vmov 0  }
 0x3e2   : > { %v2935_v40 = vrot.slane %v1081_v58, %v2682_v4  ;;  %v952_v58 = vld [vmem:[#allocation8 + $0x108] sm:$0x1] }
 0x3e3   : > { %v1433_v33 = vunpack.c.l.bf16 %v952_v58  ;;  %v3181_v58 = vld [vmem:[#allocation25_spill] sm:$0xff] }
 0x462   : > { %v1285_v28 = vpop.f32.mrf.mxu0 }
 0x463   : > { %v1286_v31 = vadd.f32 %v1285_v28, %v2935_v40 }
 0x464   : > { %v1287_v32 = vpop.f32.mrf.mxu0 }
 0x465   : > { %v1288_v34 = vadd.f32 %v1287_v32, %v2938_v27  ;;  %v1292_v35 = vmax.f32 %v1286_v31, 0.0 }
 0x466   : > { %v1289_v29 = vpop.f32.mrf.mxu0 }
 0x467   : > { %v1293_v30 = vmax.f32 %v1288_v34, 0.0  ;;  %v1294_v37 = vpack.c.bf16 %v1292_v35, %v1292_v35  ;;  %v2960_v34 = vrot.slane %v1433_v33, %v2682_v4  ;;  %v3179_v29 = vld [vmem:[#allocation19_spill] sm:$0xff]  ;;  %v3184_v4 = vld [vmem:[#allocation28_spill] sm:$0xff]  ;;  %v3185_v33 = vld [vmem:[#allocation29_spill] sm:$0xff] }
 0x468   : > { %v1290_v39 = vpop.f32.mrf.mxu0 }
 0x469   : > { %v1295_v38 = vpack.c.bf16 %v1293_v30, %v1293_v30  ;;  %v3178_v39 = vld [vmem:[#allocation23_spill] sm:$0xff] }
 0x46b   : > { %1424 = vmatprep.mubr.bf16.mxu1 %v1295_v38  ;;  %v3177_v38 = vld [vmem:[#allocation18_spill] sm:$0xff] }
 0x46c   : > { %1425 = vmatmul.mubr.bf16.vlgmr.msra.gmra.mxu1 %v1294_v37  ;;  %v3176_v37 = vld [vmem:[#allocation17_spill] sm:$0xff] }
 0x46d   : > { %1441 = vmatpush1.bf16.msra.mxu1 %v2695_v41  ;;  %1472 = vmatprep.mubr.bf16.mxu1 %v3175_v56 }
 0x46e   : > { %1442 = vmatprep.subr.bf16.mxu1 %v2697_v43 }
 0x471   : > { %1443 = vmatpush1.bf16.msra.mxu1 %v2700_v44 }
 0x472   : > { %1444 = vmatprep.subr.bf16.mxu1 %v2704_v45 }
 0x475   : > { %1445 = vmatpush1.bf16.msra.mxu1 %v2707_v46 }
 0x476   : > { %1446 = vmatprep.subr.bf16.mxu1 %v2710_v47 }
 0x479   : > { %1447 = vmatpush1.bf16.msra.mxu1 %v2713_v48 }
 0x47a   : > { %1448 = vmatprep.subr.bf16.mxu1 %v2716_v49 }
 0x47d   : > { %1449 = vmatpush1.bf16.msra.mxu1 %v2719_v50 }
 0x47e   : > { %1450 = vmatprep.subr.bf16.mxu1 %v2722_v51 }
 0x481   : > { %1451 = vmatpush1.bf16.msra.mxu1 %v2725_v52 }
 0x482   : > { %1452 = vmatprep.subr.bf16.mxu1 %v2729_v53 }
 0x485   : > { %1453 = vmatpush1.bf16.msra.mxu1 %v2731_v54 }
 0x486   : > { %1454 = vmatprep.subr.bf16.mxu1 %v3176_v37  ;;  %v3182_v37 = vld [vmem:[#allocation26_spill] sm:$0xff] }
 0x489   : > { %1455 = vmatpush1.bf16.msra.mxu1 %v3177_v38 }
 0x48a   : > { %2013 = vmatprep.subr.bf16.mxu1 %v3178_v39  ;;  %v3180_v39 = vld [vmem:[#allocation24_spill] sm:$0xff] }
 0x52c   : > { %v2007_v28 = vpop.f32.mrf.mxu1 }
 0x52e   : > { %v2008_v31 = vpop.f32.mrf.mxu1 }
 0x52f   : > { %v2009_v32 = vadd.f32 %v2008_v31, %v2007_v28  ;;  %v3183_v28 = vld [vmem:[#allocation27_spill] sm:$0xff] }
 0x530   : > { %v2010_v35 = vpop.f32.mrf.mxu1  ;;  %v3187_v31 = vld [vmem:[#allocation31_spill] sm:$0xff] }
 0x531   : > { %v1432_v30 = vadd.f32 %v2009_v32, %v3179_v29  ;;  %v3188_v32 = vld [vmem:[#allocation32_spill] sm:$0xff]  ;;  %v3189_v35 = vld [vmem:[#allocation33_spill] sm:$0xff] }
 0x532   : > { %v2011_v53 = vpop.f32.mrf.mxu1 }
 0x533   : > { %v2964_v54 = vadd.f32 %v2960_v34, %v1432_v30  ;;  %v3186_v53 = vld [vmem:[#allocation30_spill] sm:$0xff] }
 0x535   : > { %v1439_v38 = vpack.c.bf16 %v2964_v54, %v2964_v54 }
 0x537   : > { %1473 = vmatmul.mubr.bf16.vlgmr.msra.gmra.mxu1 %v1439_v38  ;;  %v3190_v38 = vld [vmem:[#allocation34_spill] sm:$0xff] }
 0x538   : > { %2014 = vmatpush3.bf16.msra.mxu1 %v3180_v39 }
 0x539   : > { %2015 = vmatprep.subr.bf16.mxu1 %v3181_v58 }
 0x53c   : > { %2016 = vmatpush3.bf16.msra.mxu1 %v3182_v37 }
 0x53d   : > { %2017 = vmatprep.subr.bf16.mxu1 %v3183_v28 }
 0x540   : > { %2018 = vmatpush3.bf16.msra.mxu1 %v3184_v4 }
 0x541   : > { %2019 = vmatprep.subr.bf16.mxu1 %v3185_v33 }
 0x544   : > { %2020 = vmatpush3.bf16.msra.mxu1 %v3186_v53 }
 0x545   : > { %2021 = vmatprep.subr.bf16.mxu1 %v3187_v31 }
 0x548   : > { %2022 = vmatpush3.bf16.msra.mxu1 %v3188_v32 }
 0x549   : > { %2023 = vmatprep.subr.bf16.mxu1 %v3189_v35 }
 0x54c   : > { %2024 = vmatpush3.bf16.msra.mxu1 %v3190_v38 }
 0x54d   : > { %2025 = vmatprep.subr.bf16.mxu1 %v2921_v0 }
 0x550   : > { %2026 = vmatpush3.bf16.msra.mxu1 %v2923_v23 }
 0x551   : > { %2027 = vmatprep.subr.bf16.mxu1 %v2927_v24 }
 0x554   : > { %2028 = vmatpush3.bf16.msra.mxu1 %v2929_v55 }
 0x555   : > { %1575 = vmatprep.subr.bf16.mxu1 %v2686_v22  ;;  %v3191_v22 = vld [vmem:[#allocation20_spill] sm:$0xff] }
 0x5f7   : > { %v1474_v29 = vpop.f32.mrf.mxu1 }
 0x5f8   : > { %v1481_v30 = vadd.f32 %v1474_v29, %v2882_v26 }
 0x5f9   : > { %v1476_v31 = vpop.f32.mrf.mxu1 }
 0x5fa   : > { %v1482_v32 = vadd.f32 %v1476_v31, %v2885_v42  ;;  %v1483_v53 = vmax.f32 %v1481_v30, 0.0 }
 0x5fb   : > { %v1478_v35 = vpop.f32.mrf.mxu1 }
 0x5fc   : > { %v1484_v33 = vmax.f32 %v1482_v32, 0.0  ;;  %v1485_v0 = vpack.c.bf16 %v1483_v53, %v1483_v53 }
 0x5fd   : > { %v1479_v38 = vpop.f32.mrf.mxu1 }
 0x5fe   : > { %v1486_v4 = vpack.c.bf16 %v1484_v33, %v1484_v33 }
 0x600   : > { %1519 = vmatprep.mubr.bf16.mxu0 %v1486_v4 }
 0x601   : > { %1520 = vmatmul.mubr.bf16.vlgmr.msra.gmra.mxu0 %v1485_v0 }
 0x602   : > { %1623 = vmatpush1.bf16.msra.mxu0 %v2741_v57  ;;  %v3192_v57 = vld [vmem:[#allocation21_spill] sm:$0xff] }
 0x603   : > { %1624 = vmatprep.subr.bf16.mxu0 %v2745_v59  ;;  %v3193_v59 = vld [vmem:[#allocation22_spill] sm:$0xff] }
 0x606   : > { %1625 = vmatpush1.bf16.msra.mxu0 %v2749_v60 }
 0x607   : > { %1626 = vmatprep.subr.bf16.mxu0 %v2752_v61 }
 0x60a   : > { %1627 = vmatpush1.bf16.msra.mxu0 %v2755_v62 }
 0x60b   : > { %1628 = vmatprep.subr.bf16.mxu0 %v2758_v63 }
 0x60e   : > { %1629 = vmatpush1.bf16.msra.mxu0 %v2761_v1 }
 0x60f   : > { %1630 = vmatprep.subr.bf16.mxu0 %v2764_v2 }
 0x612   : > { %1631 = vmatpush1.bf16.msra.mxu0 %v2767_v3 }
 0x613   : > { %1632 = vmatprep.subr.bf16.mxu0 %v2770_v5 }
 0x616   : > { %1633 = vmatpush1.bf16.msra.mxu0 %v2773_v6 }
 0x617   : > { %1634 = vmatprep.subr.bf16.mxu0 %v2776_v7 }
 0x61a   : > { %1635 = vmatpush1.bf16.msra.mxu0 %v2779_v8 }
 0x61b   : > { %1636 = vmatprep.subr.bf16.mxu0 %v2782_v9 }
 0x61e   : > { %1637 = vmatpush1.bf16.msra.mxu0 %v2785_v10  ;;  %v3199_v10 = vld [vmem:[#allocation28_spill] sm:$0xff] }
 0x61f   : > { %1638 = vmatprep.subr.bf16.mxu0 %v2788_v11  ;;  %v3200_v11 = vld [vmem:[#allocation29_spill] sm:$0xff] }
 0x622   : > { %1639 = vmatpush2.bf16.msra.mxu0 %v2791_v12  ;;  %v3201_v12 = vld [vmem:[#allocation30_spill] sm:$0xff] }
 0x623   : > { %1640 = vmatprep.subr.bf16.mxu0 %v2794_v13  ;;  %v3203_v13 = vld [vmem:[#allocation32_spill] sm:$0xff] }
 0x626   : > { %1641 = vmatpush2.bf16.msra.mxu0 %v2797_v14  ;;  %v3204_v14 = vld [vmem:[#allocation33_spill] sm:$0xff] }
 0x627   : > { %1642 = vmatprep.subr.bf16.mxu0 %v2800_v15  ;;  %v3205_v15 = vld [vmem:[#allocation34_spill] sm:$0xff] }
 0x62a   : > { %1643 = vmatpush2.bf16.msra.mxu0 %v2803_v16  ;;  %v3206_v16 = vld [vmem:[#allocation35_spill] sm:$0xff] }
 0x62b   : > { %1644 = vmatprep.subr.bf16.mxu0 %v2806_v17 }
 0x62e   : > { %1645 = vmatpush2.bf16.msra.mxu0 %v2809_v18 }
 0x62f   : > { %1646 = vmatprep.subr.bf16.mxu0 %v2812_v19 }
 0x632   : > { %1647 = vmatpush2.bf16.msra.mxu0 %v2815_v20 }
 0x633   : > { %1648 = vmatprep.subr.bf16.mxu0 %v2818_v21 }
 0x636   : > { %1649 = vmatpush2.bf16.msra.mxu0 %v2821_v25 }
 0x637   : > { %1650 = vmatprep.subr.bf16.mxu0 %v2830_v36 }
 0x63a   : > { %1651 = vmatpush2.bf16.msra.mxu0 %v3191_v22 }
 0x63b   : > { %1652 = vmatprep.subr.bf16.mxu0 %v3192_v57 }
 0x63e   : > { %1653 = vmatpush2.bf16.msra.mxu0 %v3193_v59 }
 0x6c1   : > { %v1521_v60 = vpop.f32.mrf.mxu0 }
 0x6c2   : > { %v1522_v61 = vadd.f32 %v1521_v60, %v2935_v40 }
 0x6c3   : > { %v1523_v62 = vpop.f32.mrf.mxu0 }
 0x6c4   : > { %v1524_v63 = vadd.f32 %v1523_v62, %v2938_v27  ;;  %v1528_v1 = vmax.f32 %v1522_v61, 0.0 }
 0x6c5   : > { %v1525_v2 = vpop.f32.mrf.mxu0 }
 0x6c6   : > { %v1529_v3 = vmax.f32 %v1524_v63, 0.0  ;;  %v1530_v7 = vpack.c.bf16 %v1528_v1, %v1528_v1 }
 0x6c7   : > { %v1526_v5 = vpop.f32.mrf.mxu0 }
 0x6c8   : > { %v1531_v6 = vpack.c.bf16 %v1529_v3, %v1529_v3 }
 0x6ca   : > { %1564 = vmatprep.mubr.bf16.mxu1 %v1531_v6 }
 0x6cb   : > { %1565 = vmatmul.mubr.bf16.vlgmr.msra.gmra.mxu1 %v1530_v7 }
 0x6cc   : > { %1576 = vmatpush1.bf16.msra.mxu1 %v2695_v41  ;;  %1607 = vmatprep.mubr.bf16.mxu1 %v3175_v56  ;;  %v3194_v41 = vld [vmem:[#allocation15_spill] sm:$0xff] }
 0x6cd   : > { %1577 = vmatprep.subr.bf16.mxu1 %v2697_v43  ;;  %v3195_v43 = vld [vmem:[#allocation16_spill] sm:$0xff] }
 0x6d0   : > { %1578 = vmatpush1.bf16.msra.mxu1 %v2700_v44  ;;  %v3196_v44 = vld [vmem:[#allocation17_spill] sm:$0xff] }
 0x6d1   : > { %1579 = vmatprep.subr.bf16.mxu1 %v2704_v45  ;;  %v3197_v45 = vld [vmem:[#allocation18_spill] sm:$0xff] }
 0x6d4   : > { %1580 = vmatpush1.bf16.msra.mxu1 %v2707_v46  ;;  %v3198_v46 = vld [vmem:[#allocation23_spill] sm:$0xff] }
 0x6d5   : > { %1581 = vmatprep.subr.bf16.mxu1 %v2710_v47 }
 0x6d8   : > { %1582 = vmatpush1.bf16.msra.mxu1 %v2713_v48 }
 0x6d9   : > { %1583 = vmatprep.subr.bf16.mxu1 %v2716_v49 }
 0x6dc   : > { %1584 = vmatpush1.bf16.msra.mxu1 %v2719_v50 }
 0x6dd   : > { %1585 = vmatprep.subr.bf16.mxu1 %v2722_v51 }
 0x6e0   : > { %1586 = vmatpush1.bf16.msra.mxu1 %v2725_v52 }
 0x6e1   : > { %1587 = vmatprep.subr.bf16.mxu1 %v3194_v41 }
 0x6e4   : > { %1588 = vmatpush1.bf16.msra.mxu1 %v3195_v43 }
 0x6e5   : > { %1589 = vmatprep.subr.bf16.mxu1 %v3196_v44 }
 0x6e8   : > { %1590 = vmatpush1.bf16.msra.mxu1 %v3197_v45 }
 0x6e9   : > { %2035 = vmatprep.subr.bf16.mxu1 %v3198_v46 }
 0x78b   : > { %v2029_v47 = vpop.f32.mrf.mxu1 }
 0x78d   : > { %v2030_v48 = vpop.f32.mrf.mxu1 }
 0x78e   : > { %v2031_v8 = vadd.f32 %v2030_v48, %v2029_v47 }
 0x78f   : > { %v2032_v49 = vpop.f32.mrf.mxu1 }
 0x790   : > { %v1572_v50 = vadd.f32 %v2031_v8, %v2964_v54  ;;  %v3202_v54 = vld [vmem:[#allocation31_spill] sm:$0xff] }
 0x791   : > { %v2033_v9 = vpop.f32.mrf.mxu1 }
 0x792   : > { %v1573_v51 = vadd.f32 %v1572_v50, %v2960_v34 }
 0x794   : > { %v1574_v52 = vpack.c.bf16 %v1573_v51, %v1573_v51 }
 0x796   : > { %1608 = vmatmul.mubr.bf16.vlgmr.msra.gmra.mxu1 %v1574_v52 }
 0x797   : > { %2036 = vmatpush3.bf16.msra.mxu1 %v3180_v39 }
 0x798   : > { %2037 = vmatprep.subr.bf16.mxu1 %v3181_v58 }
 0x79b   : > { %2038 = vmatpush3.bf16.msra.mxu1 %v3182_v37 }
 0x79c   : > { %2039 = vmatprep.subr.bf16.mxu1 %v3183_v28 }
 0x79f   : > { %2040 = vmatpush3.bf16.msra.mxu1 %v3199_v10 }
 0x7a0   : > { %2041 = vmatprep.subr.bf16.mxu1 %v3200_v11 }
 0x7a3   : > { %2042 = vmatpush3.bf16.msra.mxu1 %v3201_v12 }
 0x7a4   : > { %2043 = vmatprep.subr.bf16.mxu1 %v3202_v54 }
 0x7a7   : > { %2044 = vmatpush3.bf16.msra.mxu1 %v3203_v13 }
 0x7a8   : > { %2045 = vmatprep.subr.bf16.mxu1 %v3204_v14 }
 0x7ab   : > { %2046 = vmatpush3.bf16.msra.mxu1 %v3205_v15 }
 0x7ac   : > { %2047 = vmatprep.subr.bf16.mxu1 %v3206_v16 }
 0x7af   : > { %2048 = vmatpush3.bf16.msra.mxu1 %v2923_v23 }
 0x7b0   : > { %2049 = vmatprep.subr.bf16.mxu1 %v2927_v24 }
 0x7b3   : > { %2050 = vmatpush3.bf16.msra.mxu1 %v2929_v55 }
 0x856   : > { %v1609_v17 = vpop.f32.mrf.mxu1 }
 0x857   : > { %v1616_v18 = vadd.f32 %v1609_v17, %v2882_v26 }
 0x858   : > { %v1611_v19 = vpop.f32.mrf.mxu1 }
 0x859   : > { %v1617_v20 = vadd.f32 %v1611_v19, %v2885_v42  ;;  %v1618_v21 = vmax.f32 %v1616_v18, 0.0 }
 0x85a   : > { %v1613_v25 = vpop.f32.mrf.mxu1 }
 0x85b   : > { %v1619_v36 = vmax.f32 %v1617_v20, 0.0  ;;  %v1620_v37 = vpack.c.bf16 %v1618_v21, %v1618_v21 }
 0x85c   : > { %v1614_v0 = vpop.f32.mrf.mxu1 }
 0x85d   : > { %v1621_v56 = vpack.c.bf16 %v1619_v36, %v1619_v36 }
 0x85f   : > { %1654 = vmatprep.mubr.bf16.mxu0 %v1621_v56 }
 0x860   : > { %1655 = vmatmul.mubr.bf16.vlgmr.msra.gmra.mxu0 %v1620_v37 }
 0x920   : > { %v1656_v39 = vpop.f32.mrf.mxu0 }
 0x921   : > { %v1657_v23 = vadd.f32 %v1656_v39, %v2935_v40 }
 0x922   : > { %v1658_v24 = vpop.f32.mrf.mxu0 }
 0x923   : > { %v1659_v55 = vadd.f32 %v1658_v24, %v2938_v27  ;;  %v1663_v26 = vmax.f32 %v1657_v23, 0.0 }
 0x924   : > { %v1660_v58 = vpop.f32.mrf.mxu0 }
 0x925   : > { %v1664_v28 = vmax.f32 %v1659_v55, 0.0  ;;  %v1665_v33 = vpack.c.bf16 %v1663_v26, %v1663_v26 }
 0x926   : > { %v1661_v42 = vpop.f32.mrf.mxu0 }
 0x927   : > { %v1666_v4 = vpack.c.bf16 %v1664_v28, %v1664_v28 }
 0x929   : > { %1699 = vmatprep.mubr.bf16.mxu1 %v1666_v4 }
 0x92a   : > { %1700 = vmatmul.mubr.bf16.vlgmr.msra.gmra.mxu1 %v1665_v33 }
 0x9ea   : > { %v2051_v53 = vpop.f32.mrf.mxu1 }
 0x9ec   : > { %v2052_v31 = vpop.f32.mrf.mxu1 }
 0x9ed   : > { %v2053_v32 = vadd.f32 %v2052_v31, %v2051_v53 }
 0x9ee   : > { %v2054_v35 = vpop.f32.mrf.mxu1 }
 0x9ef   : > { %v1707_v40 = vadd.f32 %v2053_v32, %v1573_v51 }
 0x9f0   : > { %v2055_v27 = vpop.f32.mrf.mxu1 }
 0x9f1   : > { %v1708_v38 = vadd.f32 %v1707_v40, %v2960_v34 }
 0x9f3   : > { %1709 = vst [vmem:[%s256_s23] sm:$0xff] %v1708_v38 }
 0x9f4   : > { %2428 = shalt.err (!%p2425_p9)
}
 0x9f5   : > { %s2429_s26 = scalar_lea.hbm %s1722_s24, 128  ;;  %s2433_s13 = scalar_lea.hbm %s3099_s4, 256 }
 0x9f6   : > { %p2430_p13 = scmp.ne.s32.totalorder %s1722_s24, %s2429_s26  ;;  %p2434_p2 = scmp.lt.s32.totalorder %s1722_s24, %s3099_s4 }
 0x9f7   : > { %p2435_p11 = scmp.lt.s32.totalorder %s2433_s13, %s2429_s26 }
 0x9f8   : > { %p2431_p4 = pnand %p2430_p13, %p3207_p0 }
 0x9f9   : > { %p2436_p7 = por %p2435_p11, %p2434_p2 }
 0x9fa   : > { %p2432_p8 = pneg %p2431_p4 }
 0x9fc   : > { %p2437_p12 = pnand %p2436_p7, %p2432_p8 }
 0x9fe   : > { %2440 = shalt.err (!%p2437_p12)
}
 0x9ff   : > { %2071 = dma.vmem_to_hbm [thread:$0]  (%p3207_p0), %s1725_s12, 128, %s1722_s24, %s1711_s30  }
 0xa00 PF: > { %s1736_s28 = sand.u32 1, %s2475_s15   ;;  %p3208_p5 = scmp.ne.s32.totalorder %s3142_s22, 0 }
 0xa01   : > { %p3209_p10 = scmp.ge.s32.totalorder %s2487_s18, 2  ;;  %s1737_s21 = scalar_lea.sflag [#allocation4], %s1736_s28 }
 0xa03   : > { %p2088_p1 = pnand %p3209_p10, %p3208_p5 }
 0xa05   : > { %p2089_p3 = pneg %p2088_p1 }
 0xa07   : > { %2470 = dma.done.wait (%p2089_p3), %s1737_s21, 128  }
 0xa08   : > { %2472 = vsyncadd (%p2089_p3), %s1737_s21, 4294967168  ;;  %p19_p6 = scmp.ge.s32.totalorder %s2606_s29, 4   ;;  %s3210_s15 = smov %s2479_s16 }
 0xa09   : > { %s3211_s16 = smov %s2483_s17  ;;  %s3212_s17 = smov %s2616_s6 }
 0xa0a   : > { %s3213_s18 = smov %s2606_s29  ;;  %21 = sbr.rel (!%p19_p6) target bundleno = 7 (0x7), region = 93 }
 0xa0f   :  { %1742 = vsyncpa [#allocation3], 1 }
 0xa10   :  { %1744 = vsyncpa [#allocation3 + $0x1], 1 }
 0xa11   :  { %1745 = vsyncpa [#allocation6], 1 }
 0xa12   :  { %1746 = vsyncpa [#allocation9], 1 }
 0xa13   :  { %1747 = vsyncpa [#allocation4], 1 }
 0xa14   :  { %1749 = vsyncpa [#allocation4 + $0x1], 1 }

</bundles_post_ra>
